<compile_context>
chip_gen: v7x
topology: tpu7x:2x2x1
jax: 0.10.0
libtpu: 0.0.40
codegen_flags: <defaults>
</compile_context>

<pallas_src>
import functools

import jax
import jax.numpy as jnp
from jax.experimental import pallas as pl
from jax.experimental.pallas import tpu as pltpu

TARGETS_DELTA = 0.04
FORECASTING_DELTA = 0.04
TEMPERATURE = 0.1
TRAJ_SCORING_LAMBDA = 0.1  # traj_scoring=True


# ---------------- in-kernel helpers (trace into the kernel body) ----------------
def _huber_sum(pred, target, delta):
    d = pred - target
    ad = jnp.abs(d)
    per = jnp.where(ad < delta, 0.5 * d * d, delta * (ad - 0.5 * delta))
    return jnp.sum(per)


def _softmax_last(x):
    m = jnp.max(x, axis=-1, keepdims=True)
    e = jnp.exp(x - m)
    return e / jnp.sum(e, axis=-1, keepdims=True)


def _bce_elems(pred, target):
    # nn.BCELoss elementwise terms; PyTorch clamps each log term at -100.
    log_p = jnp.maximum(jnp.log(pred), -100.0)
    log_1mp = jnp.maximum(jnp.log(1.0 - pred), -100.0)
    return -(target * log_p + (1.0 - target) * log_1mp)


# --------------------------------- kernel ---------------------------------------
def _lite_tnt_kernel(anch_ref, off_ref, conf_ref, gt_ref,
                     fep_ref, fc_ref, gtt_ref, tconf_ref, out_ref,
                     *, tile_b, valid_batch):
    # Mask for zero-padded batch rows.  Only the BCE terms need it: huber terms of
    # all-zero padded rows are exactly zero.
    if valid_batch is not None:
        row = jax.lax.broadcasted_iota(jnp.int32, (tile_b, 1), 0)
        valid = ((pl.program_id(0) * tile_b + row) < valid_batch).astype(jnp.float32)
    else:
        valid = None

    def masked_sum(x):
        return jnp.sum(x if valid is None else x * valid)

    # ---------------- TargetsLoss ----------------
    a = anch_ref[...]                 # (TB, N, 2)
    o = off_ref[...]                  # (TB, N, 2)
    c = conf_ref[...]                 # (TB, N)
    g = gt_ref[...]                   # (TB, 2)
    n = a.shape[1]

    d = a - g[:, None, :]
    dist_sq = jnp.sum(d * d, axis=-1)                        # (TB, N) (sqrt dropped: monotone)
    min_d = jnp.min(dist_sq, axis=-1, keepdims=True)
    idx = jax.lax.broadcasted_iota(jnp.int32, dist_sq.shape, 1)
    closest = jnp.min(jnp.where(dist_sq == min_d, idx, n), axis=-1, keepdims=True)
    onehot = (idx == closest).astype(jnp.float32)            # first-min tie-break (torch.argmin)

    tg_ce = masked_sum(_bce_elems(_softmax_last(c), onehot))

    cl_a = jnp.sum(onehot[:, :, None] * a, axis=1)           # (TB, 2) gathered closest anchor
    cl_o = jnp.sum(onehot[:, :, None] * o, axis=1)           # (TB, 2) gathered closest offset
    tg_huber = _huber_sum(cl_o, g - cl_a, TARGETS_DELTA)

    # ---------------- ForecastingLoss ----------------
    fep = fep_ref[...]                # (TB, M, 2T)  (x/y interleaved on lanes)
    gtt = gtt_ref[...]                # (TB, 2T)
    gtt_b = jnp.broadcast_to(gtt[:, None, :], fep.shape)     # single mode-broadcast, reused
    tf_huber = _huber_sum(fep, gtt_b, FORECASTING_DELTA)

    # ---------------- ForecastingScoringLoss ----------------
    dd = fc_ref[...] - gtt_b
    sq = dd * dd                                              # (TB, M, 2T)
    pair = sq[:, :, :-1] + sq[:, :, 1:]                       # even lanes hold dx^2 + dy^2
    lane = jax.lax.broadcasted_iota(jnp.int32, pair.shape, 2)
    dist_max_sq = jnp.max(jnp.where((lane % 2) == 0, pair, 0.0), axis=-1)   # (TB, M)
    distances = -jnp.sqrt(dist_max_sq) / TEMPERATURE          # sqrt hoisted after the T-max
    gt_p = jnp.clip(_softmax_last(distances), 0.001, 1.0 - 0.001)
    pred_p = jnp.clip(_softmax_last(tconf_ref[...]), 0.001, 1.0 - 0.001)
    tfs = masked_sum(_bce_elems(pred_p, gt_p))

    # -------- per-tile partials: lane-dense (1, 4, 128) block, summed in XLA --------
    ridx = jax.lax.broadcasted_iota(jnp.int32, (4, 128), 0)
    tile = jnp.where(ridx == 0, tg_ce,
           jnp.where(ridx == 1, tg_huber,
           jnp.where(ridx == 2, tf_huber, tfs)))
    out_ref[...] = tile[None]


# -------------------------------- wrapper ----------------------------------------
def _choose_batch_tile(batch, per_elem_bytes, block_budget_bytes=4 << 20):
    """Largest multiple-of-8 batch tile whose input block fits the budget, preferring
    a divisor of `batch` so the big tensors never need a padding copy."""
    cap = (block_budget_bytes // max(per_elem_bytes, 1)) // 8 * 8
    cap = max(8, min(2048, cap))
    for cand in range(cap, 7, -8):
        if cand < max(8, cap // 4):
            break
        if batch % cand == 0:
            return cand
    return min(cap, ((batch + 7) // 8) * 8)


def lite_tnt_loss(anchors, offsets, confidences, ground_truth,
                  forecasted_trajectories_gt_end_point, forecasted_trajectories,
                  traj_conf, gt_traj):
    f32 = jnp.float32
    B, N, _ = anchors.shape
    M = forecasted_trajectories.shape[1]
    T = gt_traj.shape[1]
    T2 = 2 * T

    # Native layouts; only free contiguous collapses of trailing dims (no transposes).
    anch = anchors.astype(f32)
    off = offsets.astype(f32)
    conf = confidences.astype(f32)
    gt = ground_truth.astype(f32)
    fep = forecasted_trajectories_gt_end_point.astype(f32).reshape(B, M, T2)
    fc = forecasted_trajectories.astype(f32).reshape(B, M, T2)
    gtt = gt_traj.astype(f32).reshape(B, T2)      # un-expanded; mode broadcast in-kernel
    tconf = traj_conf.astype(f32)

    per_elem_bytes = 4 * (2 * N * 2 + N + 2 + 2 * M * T2 + T2 + M)
    TB = _choose_batch_tile(B, per_elem_bytes)
    B_pad = ((B + TB - 1) // TB) * TB
    if B_pad != B:
        pad = B_pad - B
        padfn = lambda x: jnp.pad(x, ((0, pad),) + ((0, 0),) * (x.ndim - 1))
        anch, off, conf, gt, fep, fc, gtt, tconf = map(
            padfn, (anch, off, conf, gt, fep, fc, gtt, tconf))

    grid = (B_pad // TB,)
    # double-buffered input blocks + elementwise temporaries of forecast-tile size + slack
    big_tile_bytes = 4 * TB * M * T2
    vmem_limit = int(min(64 << 20,
                         max(16 << 20,
                             2 * per_elem_bytes * TB + 8 * big_tile_bytes + (4 << 20))))

    cost = pl.CostEstimate(
        flops=int(B * (12 * M * T2 + 10 * N + 30 * M + 20)),
        transcendentals=int(B * (2 * N + 5 * M)),
        bytes_accessed=int(per_elem_bytes * B_pad + grid[0] * 4 * 128 * 4),
    )

    kernel = functools.partial(_lite_tnt_kernel, tile_b=TB,
                               valid_batch=(B if B_pad != B else None))

    out = pl.pallas_call(
        kernel,
        out_shape=jax.ShapeDtypeStruct((grid[0], 4, 128), f32),
        grid_spec=pltpu.PrefetchScalarGridSpec(
            num_scalar_prefetch=0,
            grid=grid,
            in_specs=[
                pl.BlockSpec((TB, N, 2), lambda i: (i, 0, 0)),   # anchors
                pl.BlockSpec((TB, N, 2), lambda i: (i, 0, 0)),   # offsets
                pl.BlockSpec((TB, N), lambda i: (i, 0)),         # confidences
                pl.BlockSpec((TB, 2), lambda i: (i, 0)),         # ground_truth
                pl.BlockSpec((TB, M, T2), lambda i: (i, 0, 0)),  # forecasts @ gt end point
                pl.BlockSpec((TB, M, T2), lambda i: (i, 0, 0)),  # forecasts (scoring)
                pl.BlockSpec((TB, T2), lambda i: (i, 0)),        # gt_traj (un-expanded)
                pl.BlockSpec((TB, M), lambda i: (i, 0)),         # traj_conf
            ],
            out_specs=pl.BlockSpec((1, 4, 128), lambda i: (i, 0, 0)),
        ),
        compiler_params=pltpu.CompilerParams(
            dimension_semantics=("parallel",),   # distinct output block per step -> megacore-safe
            vmem_limit_bytes=vmem_limit,
        ),
        cost_estimate=cost,
    )(anch, off, conf, gt, fep, fc, gtt, tconf)

    partials = jnp.sum(out[:, :, 0], axis=0)     # (4,): [tg_ce, tg_huber, tf_huber, tfs]
    tg_ce, tg_huber, tf_huber, tfs = partials[0], partials[1], partials[2], partials[3]
    total = 0.1 * tg_ce + 0.1 * tg_huber + 1.0 * tf_huber + TRAJ_SCORING_LAMBDA * tfs
    return total, tg_ce, tg_huber, tf_huber, tfs


# -------------------------- pure-JAX reference (sanity) ---------------------------
def _ref_loss(anchors, offsets, confidences, ground_truth, fep, fc, traj_conf, gt_traj):
    def huber_sum(p, t, delta):
        d = p - t
        ad = jnp.abs(d)
        return jnp.sum(jnp.where(ad < delta, 0.5 * d * d, delta * (ad - 0.5 * delta)))

    def bce_sum(p, t):
        return jnp.sum(-(t * jnp.maximum(jnp.log(p), -100.0)
                         + (1 - t) * jnp.maximum(jnp.log(1 - p), -100.0)))

    B, N, _ = anchors.shape
    gte = jnp.broadcast_to(ground_truth[:, None, :], (B, N, 2))
    dist = jnp.sqrt((anchors[..., 0] - gte[..., 0]) ** 2 + (anchors[..., 1] - gte[..., 1]) ** 2)
    ci = jnp.argmin(dist, axis=-1)
    onehot = jax.nn.one_hot(ci, N, dtype=jnp.float32)
    tg_ce = bce_sum(jax.nn.softmax(confidences, axis=-1), onehot)
    ca = anchors[jnp.arange(B), ci]
    co = offsets[jnp.arange(B), ci]
    tg_huber = huber_sum(co, ground_truth - ca, TARGETS_DELTA)

    M, T = fc.shape[1], gt_traj.shape[1]
    gtt = jnp.broadcast_to(gt_traj[:, None], (B, M, T, 2))
    tf_huber = huber_sum(fep, gtt, FORECASTING_DELTA)

    d = jnp.sqrt((fc[..., 0] - gtt[..., 0]) ** 2 + (fc[..., 1] - gtt[..., 1]) ** 2)
    distances = -jnp.max(d, axis=-1) / TEMPERATURE
    gt_p = jnp.clip(jax.nn.softmax(distances, axis=-1), 0.001, 0.999)
    pr_p = jnp.clip(jax.nn.softmax(traj_conf, axis=-1), 0.001, 0.999)
    tfs = bce_sum(pr_p, gt_p)

    total = 0.1 * tg_ce + 0.1 * tg_huber + tf_huber + TRAJ_SCORING_LAMBDA * tfs
    return total, tg_ce, tg_huber, tf_huber, tfs


if __name__ == "__main__":
    B, N, M, T = 2, 6, 6, 8
    key = jax.random.PRNGKey(0)
    ks = jax.random.split(key, 8)

    anchors = jax.random.normal(ks[0], (B, N, 2), jnp.float32)
    offsets = 0.1 * jax.random.normal(ks[1], (B, N, 2), jnp.float32)
    confidences = jax.random.normal(ks[2], (B, N), jnp.float32)
    ground_truth = jax.random.normal(ks[3], (B, 2), jnp.float32)
    fep = jax.random.normal(ks[4], (B, M, T, 2), jnp.float32)
    fc = jax.random.normal(ks[5], (B, M, T, 2), jnp.float32)
    traj_conf = jax.random.normal(ks[6], (B, M), jnp.float32)
    gt_traj = jax.random.normal(ks[7], (B, T, 2), jnp.float32)

    loss_fn = jax.jit(lite_tnt_loss)
    out = jax.block_until_ready(loss_fn(anchors, offsets, confidences, ground_truth,
                                        fep, fc, traj_conf, gt_traj))

    ref = _ref_loss(anchors, offsets, confidences, ground_truth,
                    fep, fc, traj_conf, gt_traj)
    for got, want in zip(out, ref):
        assert jnp.allclose(got, want, rtol=1e-3, atol=1e-3), (got, want)

    print("KERNEL_OK")
</pallas_src>

<mosaic_0001>
module attributes {stable_mosaic.version = 11 : i64} {
  func.func @_lite_tnt_kernel(%arg0: i32, %arg1: memref<8x6x2xf32, #tpu.memory_space<vmem>>, %arg2: memref<8x6x2xf32, #tpu.memory_space<vmem>>, %arg3: memref<8x6xf32, #tpu.memory_space<vmem>>, %arg4: memref<8x2xf32, #tpu.memory_space<vmem>>, %arg5: memref<8x6x16xf32, #tpu.memory_space<vmem>>, %arg6: memref<8x6x16xf32, #tpu.memory_space<vmem>>, %arg7: memref<8x16xf32, #tpu.memory_space<vmem>>, %arg8: memref<8x6xf32, #tpu.memory_space<vmem>>, %arg9: memref<1x4x128xf32, #tpu.memory_space<vmem>>) attributes {dimension_semantics = [#tpu.dimension_semantics<parallel>], iteration_bounds = array<i64: 1>, scalar_prefetch = 0 : i64, scratch_operands = 0 : i64, tpu.core_type = #tpu.core_type<tc>, window_params = [{transform_indices = @transform_0, window_bounds = array<i64: 8, 6, 2>}, {transform_indices = @transform_1, window_bounds = array<i64: 8, 6, 2>}, {transform_indices = @transform_2, window_bounds = array<i64: 8, 6>}, {transform_indices = @transform_3, window_bounds = array<i64: 8, 2>}, {transform_indices = @transform_4, window_bounds = array<i64: 8, 6, 16>}, {transform_indices = @transform_5, window_bounds = array<i64: 8, 6, 16>}, {transform_indices = @transform_6, window_bounds = array<i64: 8, 16>}, {transform_indices = @transform_7, window_bounds = array<i64: 8, 6>}, {transform_indices = @transform_8, window_bounds = array<i64: 1, 4, 128>}]} {
    %0 = tpu.iota {dimensions = array<i32: 0>} : vector<8x1xi32>
    %c8_i32 = arith.constant 8 : i32
    %1 = arith.muli %arg0, %c8_i32 : i32
    %2 = vector.broadcast %1 : i32 to vector<8x1xi32>
    %3 = arith.addi %2, %0 : vector<8x1xi32>
    %c2_i32 = arith.constant 2 : i32
    %4 = vector.broadcast %c2_i32 : i32 to vector<8x1xi32>
    %5 = arith.cmpi slt, %3, %4 : vector<8x1xi32>
    %6 = arith.extui %5 : vector<8x1xi1> to vector<8x1xi32>
    %7 = arith.sitofp %6 : vector<8x1xi32> to vector<8x1xf32>
    %c0 = arith.constant 0 : index
    %c0_0 = arith.constant 0 : index
    %c0_1 = arith.constant 0 : index
    %8 = vector.load %arg1[%c0, %c0_0, %c0_1] : memref<8x6x2xf32, #tpu.memory_space<vmem>>, vector<8x6x2xf32>
    %c0_2 = arith.constant 0 : index
    %c0_3 = arith.constant 0 : index
    %c0_4 = arith.constant 0 : index
    %9 = vector.load %arg2[%c0_2, %c0_3, %c0_4] : memref<8x6x2xf32, #tpu.memory_space<vmem>>, vector<8x6x2xf32>
    %c0_5 = arith.constant 0 : index
    %c0_6 = arith.constant 0 : index
    %10 = vector.load %arg3[%c0_5, %c0_6] : memref<8x6xf32, #tpu.memory_space<vmem>>, vector<8x6xf32>
    %c0_7 = arith.constant 0 : index
    %c0_8 = arith.constant 0 : index
    %11 = vector.load %arg4[%c0_7, %c0_8] : memref<8x2xf32, #tpu.memory_space<vmem>>, vector<8x2xf32>
    %12 = vector.shape_cast %11 : vector<8x2xf32> to vector<8x1x2xf32>
    %13 = vector.broadcast %12 : vector<8x1x2xf32> to vector<8x6x2xf32>
    %14 = arith.subf %8, %13 : vector<8x6x2xf32>
    %15 = arith.mulf %14, %14 : vector<8x6x2xf32>
    %cst = arith.constant dense<0.000000e+00> : vector<8x6xf32>
    %16 = vector.multi_reduction <add>, %15, %cst [2] : vector<8x6x2xf32> to vector<8x6xf32>
    %cst_9 = arith.constant dense<0x7F800000> : vector<8xf32>
    %17 = vector.multi_reduction <minimumf>, %16, %cst_9 [1] : vector<8x6xf32> to vector<8xf32>
    %18 = vector.shape_cast %17 : vector<8xf32> to vector<8x1xf32>
    %19 = tpu.iota {dimensions = array<i32: 1>} : vector<8x6xi32>
    %20 = vector.broadcast %18 : vector<8x1xf32> to vector<8x6xf32>
    %21 = arith.cmpf oeq, %16, %20 : vector<8x6xf32>
    %c6_i32 = arith.constant 6 : i32
    %22 = vector.broadcast %c6_i32 : i32 to vector<8x6xi32>
    %23 = arith.select %21, %19, %22 : vector<8x6xi1>, vector<8x6xi32>
    %cst_10 = arith.constant dense<2147483647> : vector<8xi32>
    %24 = vector.multi_reduction <minsi>, %23, %cst_10 [1] : vector<8x6xi32> to vector<8xi32>
    %25 = vector.shape_cast %24 : vector<8xi32> to vector<8x1xi32>
    %26 = vector.broadcast %25 : vector<8x1xi32> to vector<8x6xi32>
    %27 = arith.cmpi eq, %19, %26 : vector<8x6xi32>
    %28 = arith.extui %27 : vector<8x6xi1> to vector<8x6xi32>
    %29 = arith.sitofp %28 : vector<8x6xi32> to vector<8x6xf32>
    %cst_11 = arith.constant dense<0xFF800000> : vector<8xf32>
    %30 = vector.multi_reduction <maximumf>, %10, %cst_11 [1] : vector<8x6xf32> to vector<8xf32>
    %31 = vector.shape_cast %30 : vector<8xf32> to vector<8x1xf32>
    %32 = vector.broadcast %31 : vector<8x1xf32> to vector<8x6xf32>
    %33 = arith.subf %10, %32 : vector<8x6xf32>
    %34 = math.exp %33 : vector<8x6xf32>
    %cst_12 = arith.constant dense<0.000000e+00> : vector<8xf32>
    %35 = vector.multi_reduction <add>, %34, %cst_12 [1] : vector<8x6xf32> to vector<8xf32>
    %36 = vector.shape_cast %35 : vector<8xf32> to vector<8x1xf32>
    %37 = vector.broadcast %36 : vector<8x1xf32> to vector<8x6xf32>
    %38 = arith.divf %34, %37 : vector<8x6xf32>
    %39 = math.log %38 : vector<8x6xf32>
    %cst_13 = arith.constant -1.000000e+02 : f32
    %40 = vector.broadcast %cst_13 : f32 to vector<8x6xf32>
    %41 = arith.maximumf %39, %40 : vector<8x6xf32>
    %cst_14 = arith.constant 1.000000e+00 : f32
    %42 = vector.broadcast %cst_14 : f32 to vector<8x6xf32>
    %43 = arith.subf %42, %38 : vector<8x6xf32>
    %44 = math.log %43 : vector<8x6xf32>
    %cst_15 = arith.constant -1.000000e+02 : f32
    %45 = vector.broadcast %cst_15 : f32 to vector<8x6xf32>
    %46 = arith.maximumf %44, %45 : vector<8x6xf32>
    %47 = arith.mulf %29, %41 : vector<8x6xf32>
    %cst_16 = arith.constant 1.000000e+00 : f32
    %48 = vector.broadcast %cst_16 : f32 to vector<8x6xf32>
    %49 = arith.subf %48, %29 : vector<8x6xf32>
    %50 = arith.mulf %49, %46 : vector<8x6xf32>
    %51 = arith.addf %47, %50 : vector<8x6xf32>
    %cst_17 = arith.constant 0.000000e+00 : f32
    %52 = vector.broadcast %cst_17 : f32 to vector<8x6xf32>
    %53 = arith.subf %52, %51 : vector<8x6xf32>
    %54 = vector.broadcast %7 : vector<8x1xf32> to vector<8x6xf32>
    %55 = arith.mulf %53, %54 : vector<8x6xf32>
    %56 = vector.shape_cast %55 : vector<8x6xf32> to vector<1x8x6xf32>
    %cst_18 = arith.constant dense<0.000000e+00> : vector<1xf32>
    %57 = vector.multi_reduction <add>, %56, %cst_18 [1, 2] : vector<1x8x6xf32> to vector<1xf32>
    %58 = vector.shape_cast %57 : vector<1xf32> to vector<1x1x1xf32>
    %59 = vector.extract %58[0, 0, 0] : f32 from vector<1x1x1xf32>
    %60 = vector.shape_cast %29 : vector<8x6xf32> to vector<8x6x1xf32>
    %61 = vector.broadcast %60 : vector<8x6x1xf32> to vector<8x6x2xf32>
    %62 = arith.mulf %61, %8 : vector<8x6x2xf32>
    %cst_19 = arith.constant dense<0.000000e+00> : vector<8x2xf32>
    %63 = vector.multi_reduction <add>, %62, %cst_19 [1] : vector<8x6x2xf32> to vector<8x2xf32>
    %64 = vector.shape_cast %29 : vector<8x6xf32> to vector<8x6x1xf32>
    %65 = vector.broadcast %64 : vector<8x6x1xf32> to vector<8x6x2xf32>
    %66 = arith.mulf %65, %9 : vector<8x6x2xf32>
    %cst_20 = arith.constant dense<0.000000e+00> : vector<8x2xf32>
    %67 = vector.multi_reduction <add>, %66, %cst_20 [1] : vector<8x6x2xf32> to vector<8x2xf32>
    %68 = arith.subf %11, %63 : vector<8x2xf32>
    %69 = arith.subf %67, %68 : vector<8x2xf32>
    %70 = math.absf %69 : vector<8x2xf32>
    %cst_21 = arith.constant 4.000000e-02 : f32
    %71 = vector.broadcast %cst_21 : f32 to vector<8x2xf32>
    %72 = arith.cmpf olt, %70, %71 : vector<8x2xf32>
    %cst_22 = arith.constant 5.000000e-01 : f32
    %73 = vector.broadcast %cst_22 : f32 to vector<8x2xf32>
    %74 = arith.mulf %73, %69 : vector<8x2xf32>
    %75 = arith.mulf %74, %69 : vector<8x2xf32>
    %cst_23 = arith.constant 2.000000e-02 : f32
    %76 = vector.broadcast %cst_23 : f32 to vector<8x2xf32>
    %77 = arith.subf %70, %76 : vector<8x2xf32>
    %cst_24 = arith.constant 4.000000e-02 : f32
    %78 = vector.broadcast %cst_24 : f32 to vector<8x2xf32>
    %79 = arith.mulf %78, %77 : vector<8x2xf32>
    %80 = arith.select %72, %75, %79 : vector<8x2xi1>, vector<8x2xf32>
    %81 = vector.shape_cast %80 : vector<8x2xf32> to vector<1x8x2xf32>
    %cst_25 = arith.constant dense<0.000000e+00> : vector<1xf32>
    %82 = vector.multi_reduction <add>, %81, %cst_25 [1, 2] : vector<1x8x2xf32> to vector<1xf32>
    %83 = vector.shape_cast %82 : vector<1xf32> to vector<1x1x1xf32>
    %84 = vector.extract %83[0, 0, 0] : f32 from vector<1x1x1xf32>
    %c0_26 = arith.constant 0 : index
    %c0_27 = arith.constant 0 : index
    %c0_28 = arith.constant 0 : index
    %85 = vector.load %arg5[%c0_26, %c0_27, %c0_28] : memref<8x6x16xf32, #tpu.memory_space<vmem>>, vector<8x6x16xf32>
    %c0_29 = arith.constant 0 : index
    %c0_30 = arith.constant 0 : index
    %86 = vector.load %arg7[%c0_29, %c0_30] : memref<8x16xf32, #tpu.memory_space<vmem>>, vector<8x16xf32>
    %87 = vector.shape_cast %86 : vector<8x16xf32> to vector<8x1x16xf32>
    %88 = vector.shape_cast %87 : vector<8x1x16xf32> to vector<8x1x16xf32>
    %89 = vector.broadcast %88 : vector<8x1x16xf32> to vector<8x6x16xf32>
    %90 = arith.subf %85, %89 : vector<8x6x16xf32>
    %91 = math.absf %90 : vector<8x6x16xf32>
    %cst_31 = arith.constant 4.000000e-02 : f32
    %92 = vector.broadcast %cst_31 : f32 to vector<8x6x16xf32>
    %93 = arith.cmpf olt, %91, %92 : vector<8x6x16xf32>
    %cst_32 = arith.constant 5.000000e-01 : f32
    %94 = vector.broadcast %cst_32 : f32 to vector<8x6x16xf32>
    %95 = arith.mulf %94, %90 : vector<8x6x16xf32>
    %96 = arith.mulf %95, %90 : vector<8x6x16xf32>
    %cst_33 = arith.constant 2.000000e-02 : f32
    %97 = vector.broadcast %cst_33 : f32 to vector<8x6x16xf32>
    %98 = arith.subf %91, %97 : vector<8x6x16xf32>
    %cst_34 = arith.constant 4.000000e-02 : f32
    %99 = vector.broadcast %cst_34 : f32 to vector<8x6x16xf32>
    %100 = arith.mulf %99, %98 : vector<8x6x16xf32>
    %101 = arith.select %93, %96, %100 : vector<8x6x16xi1>, vector<8x6x16xf32>
    %102 = vector.shape_cast %101 : vector<8x6x16xf32> to vector<1x8x6x16xf32>
    %cst_35 = arith.constant dense<0.000000e+00> : vector<1xf32>
    %103 = vector.multi_reduction <add>, %102, %cst_35 [1, 2, 3] : vector<1x8x6x16xf32> to vector<1xf32>
    %104 = vector.shape_cast %103 : vector<1xf32> to vector<1x1x1x1xf32>
    %105 = vector.extract %104[0, 0, 0, 0] : f32 from vector<1x1x1x1xf32>
    %c0_36 = arith.constant 0 : index
    %c0_37 = arith.constant 0 : index
    %c0_38 = arith.constant 0 : index
    %106 = vector.load %arg6[%c0_36, %c0_37, %c0_38] : memref<8x6x16xf32, #tpu.memory_space<vmem>>, vector<8x6x16xf32>
    %107 = arith.subf %106, %89 : vector<8x6x16xf32>
    %108 = arith.mulf %107, %107 : vector<8x6x16xf32>
    %109 = vector.extract_strided_slice %108 {offsets = [0, 0, 0], sizes = [8, 6, 15], strides = [1, 1, 1]} : vector<8x6x16xf32> to vector<8x6x15xf32>
    %110 = vector.extract_strided_slice %108 {offsets = [0, 0, 1], sizes = [8, 6, 15], strides = [1, 1, 1]} : vector<8x6x16xf32> to vector<8x6x15xf32>
    %111 = arith.addf %109, %110 : vector<8x6x15xf32>
    %112 = tpu.iota {dimensions = array<i32: 2>} : vector<8x6x15xi32>
    %c2_i32_39 = arith.constant 2 : i32
    %c0_i32 = arith.constant 0 : i32
    %113 = arith.cmpi eq, %c2_i32_39, %c0_i32 : i32
    %c1_i32 = arith.constant 1 : i32
    %114 = arith.select %113, %c1_i32, %c2_i32_39 : i32
    %115 = vector.broadcast %114 : i32 to vector<8x6x15xi32>
    %116 = arith.remsi %112, %115 : vector<8x6x15xi32>
    %c0_i32_40 = arith.constant 0 : i32
    %117 = vector.broadcast %c0_i32_40 : i32 to vector<8x6x15xi32>
    %118 = arith.cmpi ne, %116, %117 : vector<8x6x15xi32>
    %c0_i32_41 = arith.constant 0 : i32
    %119 = vector.broadcast %c0_i32_41 : i32 to vector<8x6x15xi32>
    %120 = arith.cmpi slt, %116, %119 : vector<8x6x15xi32>
    %c0_i32_42 = arith.constant 0 : i32
    %121 = arith.cmpi slt, %114, %c0_i32_42 : i32
    %122 = vector.broadcast %121 : i1 to vector<8x6x15xi1>
    %123 = vector.broadcast %122 : vector<8x6x15xi1> to vector<8x6x15xi1>
    %124 = arith.xori %120, %123 : vector<8x6x15xi1>
    %125 = arith.andi %124, %118 : vector<8x6x15xi1>
    %126 = vector.broadcast %114 : i32 to vector<8x6x15xi32>
    %127 = arith.addi %116, %126 : vector<8x6x15xi32>
    %128 = arith.select %125, %127, %116 : vector<8x6x15xi1>, vector<8x6x15xi32>
    %c0_i32_43 = arith.constant 0 : i32
    %129 = vector.broadcast %c0_i32_43 : i32 to vector<8x6x15xi32>
    %130 = arith.cmpi eq, %128, %129 : vector<8x6x15xi32>
    %cst_44 = arith.constant 0.000000e+00 : f32
    %131 = vector.broadcast %cst_44 : f32 to vector<8x6x15xf32>
    %132 = arith.select %130, %111, %131 : vector<8x6x15xi1>, vector<8x6x15xf32>
    %cst_45 = arith.constant dense<0xFF800000> : vector<8x6xf32>
    %133 = vector.multi_reduction <maximumf>, %132, %cst_45 [2] : vector<8x6x15xf32> to vector<8x6xf32>
    %134 = math.sqrt %133 : vector<8x6xf32>
    %cst_46 = arith.constant 0.000000e+00 : f32
    %135 = vector.broadcast %cst_46 : f32 to vector<8x6xf32>
    %136 = arith.subf %135, %134 : vector<8x6xf32>
    %cst_47 = arith.constant 1.000000e-01 : f32
    %137 = vector.broadcast %cst_47 : f32 to vector<8x6xf32>
    %138 = arith.divf %136, %137 : vector<8x6xf32>
    %cst_48 = arith.constant dense<0xFF800000> : vector<8xf32>
    %139 = vector.multi_reduction <maximumf>, %138, %cst_48 [1] : vector<8x6xf32> to vector<8xf32>
    %140 = vector.shape_cast %139 : vector<8xf32> to vector<8x1xf32>
    %141 = vector.broadcast %140 : vector<8x1xf32> to vector<8x6xf32>
    %142 = arith.subf %138, %141 : vector<8x6xf32>
    %143 = math.exp %142 : vector<8x6xf32>
    %cst_49 = arith.constant dense<0.000000e+00> : vector<8xf32>
    %144 = vector.multi_reduction <add>, %143, %cst_49 [1] : vector<8x6xf32> to vector<8xf32>
    %145 = vector.shape_cast %144 : vector<8xf32> to vector<8x1xf32>
    %146 = vector.broadcast %145 : vector<8x1xf32> to vector<8x6xf32>
    %147 = arith.divf %143, %146 : vector<8x6xf32>
    %cst_50 = arith.constant 1.000000e-03 : f32
    %cst_51 = arith.constant 9.990000e-01 : f32
    %148 = vector.broadcast %cst_50 : f32 to vector<8x6xf32>
    %149 = arith.maximumf %148, %147 : vector<8x6xf32>
    %150 = vector.broadcast %cst_51 : f32 to vector<8x6xf32>
    %151 = arith.minimumf %150, %149 : vector<8x6xf32>
    %c0_52 = arith.constant 0 : index
    %c0_53 = arith.constant 0 : index
    %152 = vector.load %arg8[%c0_52, %c0_53] : memref<8x6xf32, #tpu.memory_space<vmem>>, vector<8x6xf32>
    %cst_54 = arith.constant dense<0xFF800000> : vector<8xf32>
    %153 = vector.multi_reduction <maximumf>, %152, %cst_54 [1] : vector<8x6xf32> to vector<8xf32>
    %154 = vector.shape_cast %153 : vector<8xf32> to vector<8x1xf32>
    %155 = vector.broadcast %154 : vector<8x1xf32> to vector<8x6xf32>
    %156 = arith.subf %152, %155 : vector<8x6xf32>
    %157 = math.exp %156 : vector<8x6xf32>
    %cst_55 = arith.constant dense<0.000000e+00> : vector<8xf32>
    %158 = vector.multi_reduction <add>, %157, %cst_55 [1] : vector<8x6xf32> to vector<8xf32>
    %159 = vector.shape_cast %158 : vector<8xf32> to vector<8x1xf32>
    %160 = vector.broadcast %159 : vector<8x1xf32> to vector<8x6xf32>
    %161 = arith.divf %157, %160 : vector<8x6xf32>
    %cst_56 = arith.constant 1.000000e-03 : f32
    %cst_57 = arith.constant 9.990000e-01 : f32
    %162 = vector.broadcast %cst_56 : f32 to vector<8x6xf32>
    %163 = arith.maximumf %162, %161 : vector<8x6xf32>
    %164 = vector.broadcast %cst_57 : f32 to vector<8x6xf32>
    %165 = arith.minimumf %164, %163 : vector<8x6xf32>
    %166 = math.log %165 : vector<8x6xf32>
    %cst_58 = arith.constant -1.000000e+02 : f32
    %167 = vector.broadcast %cst_58 : f32 to vector<8x6xf32>
    %168 = arith.maximumf %166, %167 : vector<8x6xf32>
    %cst_59 = arith.constant 1.000000e+00 : f32
    %169 = vector.broadcast %cst_59 : f32 to vector<8x6xf32>
    %170 = arith.subf %169, %165 : vector<8x6xf32>
    %171 = math.log %170 : vector<8x6xf32>
    %cst_60 = arith.constant -1.000000e+02 : f32
    %172 = vector.broadcast %cst_60 : f32 to vector<8x6xf32>
    %173 = arith.maximumf %171, %172 : vector<8x6xf32>
    %174 = arith.mulf %151, %168 : vector<8x6xf32>
    %cst_61 = arith.constant 1.000000e+00 : f32
    %175 = vector.broadcast %cst_61 : f32 to vector<8x6xf32>
    %176 = arith.subf %175, %151 : vector<8x6xf32>
    %177 = arith.mulf %176, %173 : vector<8x6xf32>
    %178 = arith.addf %174, %177 : vector<8x6xf32>
    %cst_62 = arith.constant 0.000000e+00 : f32
    %179 = vector.broadcast %cst_62 : f32 to vector<8x6xf32>
    %180 = arith.subf %179, %178 : vector<8x6xf32>
    %181 = vector.broadcast %7 : vector<8x1xf32> to vector<8x6xf32>
    %182 = arith.mulf %180, %181 : vector<8x6xf32>
    %183 = vector.shape_cast %182 : vector<8x6xf32> to vector<1x8x6xf32>
    %cst_63 = arith.constant dense<0.000000e+00> : vector<1xf32>
    %184 = vector.multi_reduction <add>, %183, %cst_63 [1, 2] : vector<1x8x6xf32> to vector<1xf32>
    %185 = vector.shape_cast %184 : vector<1xf32> to vector<1x1x1xf32>
    %186 = vector.extract %185[0, 0, 0] : f32 from vector<1x1x1xf32>
    %187 = tpu.iota {dimensions = array<i32: 0>} : vector<4x128xi32>
    %c0_i32_64 = arith.constant 0 : i32
    %188 = vector.broadcast %c0_i32_64 : i32 to vector<4x128xi32>
    %189 = arith.cmpi eq, %187, %188 : vector<4x128xi32>
    %c1_i32_65 = arith.constant 1 : i32
    %190 = vector.broadcast %c1_i32_65 : i32 to vector<4x128xi32>
    %191 = arith.cmpi eq, %187, %190 : vector<4x128xi32>
    %c2_i32_66 = arith.constant 2 : i32
    %192 = vector.broadcast %c2_i32_66 : i32 to vector<4x128xi32>
    %193 = arith.cmpi eq, %187, %192 : vector<4x128xi32>
    %194 = vector.broadcast %105 : f32 to vector<4x128xf32>
    %195 = vector.broadcast %186 : f32 to vector<4x128xf32>
    %196 = arith.select %193, %194, %195 : vector<4x128xi1>, vector<4x128xf32>
    %197 = vector.broadcast %84 : f32 to vector<4x128xf32>
    %198 = arith.select %191, %197, %196 : vector<4x128xi1>, vector<4x128xf32>
    %199 = vector.broadcast %59 : f32 to vector<4x128xf32>
    %200 = arith.select %189, %199, %198 : vector<4x128xi1>, vector<4x128xf32>
    %201 = vector.shape_cast %200 : vector<4x128xf32> to vector<1x4x128xf32>
    %c0_67 = arith.constant 0 : index
    %c0_68 = arith.constant 0 : index
    %c0_69 = arith.constant 0 : index
    %202 = vector.load %arg9[%c0_67, %c0_68, %c0_69] : memref<1x4x128xf32, #tpu.memory_space<vmem>>, vector<1x4x128xf32>
    tpu.vector_store %arg9[%c0_67, %c0_68, %c0_69], %201 {strides = array<i32>} : memref<1x4x128xf32, #tpu.memory_space<vmem>>, vector<1x4x128xf32>,
    return
  }
  func.func @transform_0(%arg0: i32) -> (i32, i32, i32) {
    %c0_i32 = arith.constant 0 : i32
    %c0_i32_0 = arith.constant 0 : i32
    %c0_i32_1 = arith.constant 0 : i32
    return %arg0, %c0_i32, %c0_i32_0 : i32, i32, i32
  }
  func.func @transform_1(%arg0: i32) -> (i32, i32, i32) {
    %c0_i32 = arith.constant 0 : i32
    %c0_i32_0 = arith.constant 0 : i32
    %c0_i32_1 = arith.constant 0 : i32
    return %arg0, %c0_i32, %c0_i32_0 : i32, i32, i32
  }
  func.func @transform_2(%arg0: i32) -> (i32, i32) {
    %c0_i32 = arith.constant 0 : i32
    %c0_i32_0 = arith.constant 0 : i32
    return %arg0, %c0_i32 : i32, i32
  }
  func.func @transform_3(%arg0: i32) -> (i32, i32) {
    %c0_i32 = arith.constant 0 : i32
    %c0_i32_0 = arith.constant 0 : i32
    return %arg0, %c0_i32 : i32, i32
  }
  func.func @transform_4(%arg0: i32) -> (i32, i32, i32) {
    %c0_i32 = arith.constant 0 : i32
    %c0_i32_0 = arith.constant 0 : i32
    %c0_i32_1 = arith.constant 0 : i32
    return %arg0, %c0_i32, %c0_i32_0 : i32, i32, i32
  }
  func.func @transform_5(%arg0: i32) -> (i32, i32, i32) {
    %c0_i32 = arith.constant 0 : i32
    %c0_i32_0 = arith.constant 0 : i32
    %c0_i32_1 = arith.constant 0 : i32
    return %arg0, %c0_i32, %c0_i32_0 : i32, i32, i32
  }
  func.func @transform_6(%arg0: i32) -> (i32, i32) {
    %c0_i32 = arith.constant 0 : i32
    %c0_i32_0 = arith.constant 0 : i32
    return %arg0, %c0_i32 : i32, i32
  }
  func.func @transform_7(%arg0: i32) -> (i32, i32) {
    %c0_i32 = arith.constant 0 : i32
    %c0_i32_0 = arith.constant 0 : i32
    return %arg0, %c0_i32 : i32, i32
  }
  func.func @transform_8(%arg0: i32) -> (i32, i32, i32) {
    %c0_i32 = arith.constant 0 : i32
    %c0_i32_0 = arith.constant 0 : i32
    %c0_i32_1 = arith.constant 0 : i32
    return %arg0, %c0_i32, %c0_i32_0 : i32, i32, i32
  }
}

</mosaic_0001>

<bundles_post_ra>
// kernel: lite_tnt_loss.1
= control target key start
LH: loop header
LB: loop body
LE: loop exit
PB: predicated region body
PF: predicated region fallthrough
CT: control target
= control target key end

     0   :  { %v29_v0 = vlaneseq  ;;  %v1816_v1 = vmov 1966171168   ;;  %s1817_s16 = smov 127   ;;  %vm2729_vm0 = vcmask 13312   ;;  %vm1010_vm2 = vcmask 119808   ;;  %s2720_s6 = inlined_call_operand.vmem [shape: f32[8,16], index: 6, kind: input, shape index: {}]   ;;  %s2721_s5 = inlined_call_operand.vmem [shape: f32[8,6,16], index: 5, kind: input, shape index: {}]   ;;  %s2722_s3 = inlined_call_operand.vmem [shape: f32[8,2], index: 3, kind: input, shape index: {}]   ;;  %s2723_s0 = inlined_call_operand.vmem [shape: f32[8,6,2], index: 0, kind: input, shape index: {}]   ;;  %s2724_s7 = inlined_call_operand.vmem [shape: f32[8,6], index: 7, kind: input, shape index: {}]   ;;  %s2725_s2 = inlined_call_operand.vmem [shape: f32[8,6], index: 2, kind: input, shape index: {}]   ;;  %s2726_s4 = inlined_call_operand.vmem [shape: f32[8,6,16], index: 4, kind: input, shape index: {}]   ;;  %s2727_s1 = inlined_call_operand.vmem [shape: f32[8,6,2], index: 1, kind: input, shape index: {}]   ;;  %s2728_s8 = inlined_call_operand.vmem [shape: f32[1,4,128], index: 8, kind: output, shape index: {}]  }
   0x1   :  { %v58_v2 = vunpack.c.l.s4 %v1816_v1  ;;  %v745_v4 = vld [vmem:[%s2720_s6] sm:$0xff]  ;;  %v927_v21 = vld [vmem:[%s2721_s5 + $0x10] sm:$0x3f]  ;;  %v930_v29 = vld [vmem:[%s2721_s5 + $0x28] sm:$0x3f]  ;;  %vm228_vm3 = vcmask 1041409  }
   0x2   :  { %v1866_v3 = vshrl.u32 %v29_v0, 7  ;;  %v747_v6 = vcombine.high %v745_v4, %v745_v4  ;;  %v925_v15 = vld [vmem:[%s2721_s5] sm:$0x3f]  ;;  %v926_v31 = vld [vmem:[%s2721_s5 + $0x8] sm:$0x3f]  ;;  %vm230_vm4 = vcmask 1042434  }
   0x3   :  { %v59_v5 = vunpack.c.0.s8 %v58_v2  ;;  %v929_v16 = vld [vmem:[%s2721_s5 + $0x20] sm:$0x3f]  ;;  %v928_v40 = vld [vmem:[%s2721_s5 + $0x18] sm:$0x3f]  ;;  %v931_v41 = vld [vmem:[%s2721_s5 + $0x30] sm:$0x3f] }
   0x4   :  { %2733 = vst [vmem:[#allocation2_spill] sm:$0xff] %v1866_v3  ;;  %v1875_v8 = vsub.s32 0, %v1866_v3  ;;  %v932_v47 = vld [vmem:[%s2721_s5 + $0x38] sm:$0x3f]  ;;  %v54_v53 = vld [vmem:[%s2722_s3] sm:$0xff]  ;;  %vm232_vm5 = vcmask 1043459  }
   0x5   :  { %v1872_v7 = vsub.s32 %v59_v5, %v1866_v3  ;;  %v56_v57 = vcombine.high %v54_v53, %v54_v53  ;;  %v37_v60 = vld [vmem:[%s2723_s0] sm:$0x3f]  ;;  %v39_v2 = vld [vmem:[%s2723_s0 + $0x10] sm:$0x3f]  ;;  %vm234_vm6 = vcmask 1044484   ;;  %vm236_vm7 = vcmask 1045509  }
   0x6   :  { %vm238_vm8 = vcmask 1046534   ;;  %vm240_vm9 = vcmask 1047559   ;;  %vm243_vm10 = vcmask 48128  }
   0x7   :  { %v754_v9 = vrot.slane %v745_v4, %v1872_v7  ;;  %v761_v10 = vrot.slane %v747_v6, %v1872_v7  ;;  %v63_v54 = vrot.slane %v54_v53, %v1872_v7  ;;  %v70_v62 = vrot.slane %v56_v57, %v1872_v7 }
   0x9   :  { %v762_v11 = vcombine.high %v754_v9, %v754_v9  ;;  %v770_v12 = vrot.slane %v754_v9, %v1872_v7  ;;  %v777_v13 = vrot.slane %v761_v10, %v1872_v7  ;;  %v763_v14 = vcombine.high %v761_v10, %v761_v10 }
   0xa   :  { %v79_v55 = vrot.slane %v63_v54, %v1872_v7  ;;  %v71_v56 = vcombine.high %v63_v54, %v63_v54  ;;  %v72_v5 = vcombine.high %v70_v62, %v70_v62  ;;  %v86_v10 = vrot.slane %v70_v62, %v1872_v7 }
   0xb   :  { %v1888_v17 = vrot.slane %v770_v12, %v1875_v8  ;;  %v792_v18 = vcombine.high %v770_v12, %v770_v12  ;;  %v1891_v19 = vrot.slane %v777_v13, %v1875_v8  ;;  %v791_v20 = vrot.slane %v763_v14, %v1872_v7  ;;  %v38_v14 = vld [vmem:[%s2723_s0 + $0x8] sm:$0x3f] }
   0xc   :  { %v784_v22 = vrot.slane %v762_v11, %v1872_v7  ;;  %v793_v36 = vcombine.high %v777_v13, %v777_v13  ;;  %v108_v58 = vrot.slane %v79_v55, %v1875_v8  ;;  %v101_v59 = vcombine.high %v79_v55, %v79_v55 }
   0xd   :  { %v933_v23 = vsub.f32 %v925_v15, %v1888_v17  ;;  %v1900_v24 = vrot.slane %v792_v18, %v1875_v8  ;;  %v937_v25 = vsub.f32 %v929_v16, %v1891_v19  ;;  %v1904_v26 = vrot.slane %v791_v20, %v1875_v8  ;;  %v40_v15 = vld [vmem:[%s2723_s0 + $0x18] sm:$0x3f] }
   0xe   :  { %v1913_v30 = vrot.slane %v784_v22, %v1875_v8  ;;  %v794_v35 = vcombine.high %v784_v22, %v784_v22  ;;  %v1941_v43 = vrot.slane %v793_v36, %v1875_v8  ;;  %v795_v44 = vcombine.high %v791_v20, %v791_v20 }
   0xf   :  { %v1906_v27 = vmul.f32 %v933_v23, %v933_v23  ;;  %v935_v28 = vsub.f32 %v927_v21, %v1900_v24  ;;  %v1921_v33 = vmul.f32 %v937_v25, %v937_v25  ;;  %v938_v34 = vsub.f32 %v930_v29, %v1904_v26  ;;  %v42_v29 = vld [vmem:[%s2723_s0 + $0x28] sm:$0x3f] }
  0x10   :  { %v934_v37 = vsub.f32 %v926_v31, %v1913_v30  ;;  %v1938_v42 = vrot.slane %v794_v35, %v1875_v8  ;;  %v939_v46 = vsub.f32 %v931_v41, %v1941_v43  ;;  %v1951_v48 = vrot.slane %v795_v44, %v1875_v8  ;;  %v43_v41 = vld [vmem:[%s2723_s0 + $0x30] sm:$0x3f] }
  0x11   :  { %957 = vrot.lane.b32.xlu0 %v1906_v27, %s1817_s16  ;;  %v1919_v32 = vmul.f32 %v935_v28, %v935_v28  ;;  %v1926_v38 = vmul.f32 %v938_v34, %v938_v34  ;;  %v93_v61 = vrot.slane %v71_v56, %v1872_v7  ;;  %v145_v63 = vsub.f32 %v37_v60, %v108_v58 }
  0x12   :  { %v1929_v39 = vmul.f32 %v934_v37, %v934_v37  ;;  %v936_v45 = vsub.f32 %v928_v40, %v1938_v42  ;;  %v1955_v50 = vmul.f32 %v939_v46, %v939_v46  ;;  %v940_v51 = vsub.f32 %v932_v47, %v1951_v48 }
  0x13   :  { %961 = vrot.lane.b32.xlu1 %v1919_v32, %s1817_s16  ;;  %v116_v1 = vrot.slane %v101_v59, %v1875_v8  ;;  %v103_v4 = vcombine.high %v93_v61, %v93_v61  ;;  %v153_v6 = vmul.f32 %v145_v63, %v145_v63  ;;  %v112_v11 = vrot.slane %v93_v61, %v1875_v8 }
  0x14   :  { %v1953_v49 = vmul.f32 %v936_v45, %v936_v45  ;;  %v1960_v52 = vmul.f32 %v940_v51, %v940_v51  ;;  %v100_v13 = vrot.slane %v72_v5, %v1872_v7  ;;  %v124_v20 = vrot.slane %v86_v10, %v1875_v8  ;;  %v41_v7 = vld [vmem:[%s2723_s0 + $0x20] sm:$0x3f]  ;;  %v44_v45 = vld [vmem:[%s2723_s0 + $0x38] sm:$0x3f] }
  0x15   :  { %965 = vrot.lane.b32.xlu0 %v1921_v33, %s1817_s16  ;;  %v147_v9 = vsub.f32 %v39_v2, %v116_v1  ;;  %v120_v12 = vrot.slane %v103_v4, %v1875_v8  ;;  %v162_v16 = vsel %vm2729_vm0, %v153_v6, 0.0  ;;  %v102_v21 = vcombine.high %v86_v10, %v86_v10 }
  0x16   :  { %v146_v22 = vsub.f32 %v38_v14, %v112_v11  ;;  %v128_v25 = vrot.slane %v100_v13, %v1875_v8  ;;  %v104_v28 = vcombine.high %v100_v13, %v100_v13  ;;  %v149_v34 = vsub.f32 %v41_v7, %v124_v20 }
  0x17   :  { %967 = vrot.lane.b32.xlu1 %v1926_v38, %s1817_s16  ;;  %v155_v18 = vmul.f32 %v147_v9, %v147_v9  ;;  %v148_v23 = vsub.f32 %v40_v15, %v120_v12  ;;  %v132_v35 = vrot.slane %v102_v21, %v1875_v8  ;;  %v2013_v62 = vand.u32 127, %v29_v0 }
  0x18   :  { %v154_v36 = vmul.f32 %v146_v22, %v146_v22  ;;  %v150_v40 = vsub.f32 %v42_v29, %v128_v25  ;;  %v136_v44 = vrot.slane %v104_v28, %v1875_v8  ;;  %v157_v46 = vmul.f32 %v149_v34, %v149_v34 }
  0x19   :  { %959 = vrot.lane.b32.xlu0 %v1929_v39, %s1817_s16  ;;  %v168_v31 = vsel %vm2729_vm0, %v155_v18, 0.0  ;;  %v156_v37 = vmul.f32 %v148_v23, %v148_v23  ;;  %v151_v47 = vsub.f32 %v43_v41, %v132_v35  ;;  %v993_v63 = vand.u32 1, %v2013_v62 }
  0x1a   :  { %v165_v51 = vsel %vm2729_vm0, %v154_v36, 0.0  ;;  %v158_v54 = vmul.f32 %v150_v40, %v150_v40  ;;  %v152_v55 = vsub.f32 %v44_v45, %v136_v44  ;;  %v174_v56 = vsel %vm2729_vm0, %v157_v46, 0.0 }
  0x1b   :  { %963 = vrot.lane.b32.xlu1 %v1953_v49, %s1817_s16  ;;  %v171_v53 = vsel %vm2729_vm0, %v156_v37, 0.0  ;;  %v159_v58 = vmul.f32 %v151_v47, %v151_v47  ;;  %vm2016_vm1 = vcmp.eq.s32.totalorder %v993_v63, 0 }
  0x1c   :  { %v177_v57 = vsel %vm2729_vm0, %v158_v54, 0.0  ;;  %v160_v59 = vmul.f32 %v152_v55, %v152_v55 }
  0x1d   :  { %969 = vrot.lane.b32.xlu0 %v1955_v50, %s1817_s16  ;;  %v180_v60 = vsel %vm2729_vm0, %v159_v58, 0.0 }
  0x1e   :  { %v183_v61 = vsel %vm2729_vm0, %v160_v59, 0.0 }
  0x1f   :  { %971 = vrot.lane.b32.xlu1 %v1960_v52, %s1817_s16 }
  0x3c   :  { %163 = vadd.xlane.f32.xlu0 %v162_v16 }
  0x40   :  { %169 = vadd.xlane.f32.xlu0 %v168_v31 }
  0x43   :  { %166 = vadd.xlane.f32.xlu1 %v165_v51 }
  0x44   :  { %172 = vadd.xlane.f32.xlu0 %v171_v53 }
  0x47   :  { %175 = vadd.xlane.f32.xlu1 %v174_v56 }
  0x48   :  { %178 = vadd.xlane.f32.xlu0 %v177_v57 }
  0x4b   :  { %181 = vadd.xlane.f32.xlu1 %v180_v60 }
  0x4c   :  { %184 = vadd.xlane.f32.xlu0 %v183_v61 }
  0x83   :  { %v958_v1 = vpop.permute.xlu0 %957 }
  0x84   :  { %v981_v4 = vadd.f32 %v958_v1, %v1906_v27 }
  0x85   :  { %v962_v5 = vpop.permute.xlu1 %961 }
  0x86   :  { %v1002_v6 = vsel %vm2016_vm1, %v981_v4, 0.0  ;;  %v983_v0 = vadd.f32 %v962_v5, %v1919_v32 }
  0x87   :  { %v966_v9 = vpop.permute.xlu0 %965  ;;  %v1011_v10 = vsel %vm1010_vm2, %v1002_v6, -inf  ;;  %v2099_v6 = vld [vmem:[%s2724_s7] sm:$0xff] }
  0x88   :  { %v985_v11 = vadd.f32 %v966_v9, %v1921_v33  ;;  %1012 = vmax.xlane.f32.xlu1 %v1011_v10  ;;  %v1004_v18 = vsel %vm2016_vm1, %v983_v0, 0.0  ;;  %v1373_v10 = vsel %vm243_vm10, %v2099_v6, -inf  ;;  %v1818_v0 = vmov 0  }
  0x89   :  { %v968_v12 = vpop.permute.xlu1 %967  ;;  %v1017_v21 = vsel %vm1010_vm2, %v1004_v18, -inf  ;;  %1740 = vset.pattern.permute.xlu0 %v1818_v0  ;;  %1739 = vset.pattern.permute.xlu1 %v1818_v0 }
  0x8a   :  { %v1006_v13 = vsel %vm2016_vm1, %v985_v11, 0.0  ;;  %v986_v15 = vadd.f32 %v968_v12, %v1926_v38 }
  0x8b   :  { %v960_v14 = vpop.permute.xlu0 %959  ;;  %v1023_v27 = vsel %vm1010_vm2, %v1006_v13, -inf }
  0x8c   :  { %v982_v16 = vadd.f32 %v960_v14, %v1929_v39  ;;  %1024 = vmax.xlane.f32.xlu1 %v1023_v27  ;;  %v1007_v38 = vsel %vm2016_vm1, %v986_v15, 0.0 }
  0x8d   :  { %v964_v20 = vpop.permute.xlu1 %963  ;;  %v1026_v29 = vsel %vm1010_vm2, %v1007_v38, -inf }
  0x8e   :  { %v1003_v32 = vsel %vm2016_vm1, %v982_v16, 0.0  ;;  %v984_v23 = vadd.f32 %v964_v20, %v1953_v49 }
  0x8f   :  { %v970_v33 = vpop.permute.xlu0 %969  ;;  %v1014_v22 = vsel %vm1010_vm2, %v1003_v32, -inf }
  0x90   :  { %v987_v7 = vadd.f32 %v970_v33, %v1955_v50  ;;  %1018 = vmax.xlane.f32.xlu1 %v1017_v21  ;;  %1015 = vmax.xlane.f32.xlu0 %v1014_v22  ;;  %v1005_v49 = vsel %vm2016_vm1, %v984_v23, 0.0 }
  0x91   :  { %v972_v39 = vpop.permute.xlu1 %971  ;;  %v1020_v50 = vsel %vm1010_vm2, %v1005_v49, -inf }
  0x92   :  { %v1008_v25 = vsel %vm2016_vm1, %v987_v7, 0.0  ;;  %v988_v31 = vadd.f32 %v972_v39, %v1960_v52  ;;  %v2059_v52 = vsub.s32 %v2013_v62, %v1866_v3 }
  0x93   :  { %v1029_v28 = vsel %vm1010_vm2, %v1008_v25, -inf }
  0x94   :  { %1030 = vmax.xlane.f32.xlu1 %v1029_v28  ;;  %1027 = vmax.xlane.f32.xlu0 %v1026_v29  ;;  %v1009_v34 = vsel %vm2016_vm1, %v988_v31, 0.0 }
  0x95   :  { %v1032_v35 = vsel %vm1010_vm2, %v1009_v34, -inf }
  0x98   :  { %1021 = vmax.xlane.f32.xlu0 %v1020_v50 }
  0x9c   :  { %1033 = vmax.xlane.f32.xlu0 %v1032_v35 }
  0xb2   :  { %297 = vbcast.lane.b32.xlu0 %v2013_v62, 256 }
  0xc9   :  { %v2053_v36 = vpop.xlane.xlu0 %163 }
  0xca   :  { %v199_v44 = vrot.slane %v2053_v36, %v2059_v52 }
  0xcd   :  { %v2055_v37 = vpop.xlane.xlu0 %169 }
  0xce   :  { %v207_v47 = vrot.slane %v2055_v37, %v2059_v52 }
  0xd0   :  { %v2061_v40 = vpop.xlane.xlu1 %166 }
  0xd1   :  { %v2063_v41 = vpop.xlane.xlu0 %172  ;;  %v203_v45 = vrot.slane %v2061_v40, %v2059_v52 }
  0xd2   :  { %v211_v46 = vrot.slane %v2063_v41, %v2059_v52 }
  0xd3   :  { %v229_v51 = vsel %vm228_vm3, %v203_v45, %v199_v44 }
  0xd4   :  { %v231_v53 = vsel %vm230_vm4, %v207_v47, %v229_v51  ;;  %v2075_v54 = vpop.xlane.xlu1 %175 }
  0xd5   :  { %v2077_v55 = vpop.xlane.xlu0 %178  ;;  %v233_v56 = vsel %vm232_vm5, %v211_v46, %v231_v53  ;;  %v215_v57 = vrot.slane %v2075_v54, %v2059_v52 }
  0xd6   :  { %v219_v58 = vrot.slane %v2077_v55, %v2059_v52 }
  0xd7   :  { %v235_v59 = vsel %vm234_vm6, %v215_v57, %v233_v56 }
  0xd8   :  { %v2085_v60 = vpop.xlane.xlu1 %181  ;;  %v237_v2 = vsel %vm236_vm7, %v219_v58, %v235_v59 }
  0xd9   :  { %v2087_v61 = vpop.xlane.xlu0 %184  ;;  %v223_v63 = vrot.slane %v2085_v60, %v2059_v52 }
  0xda   :  { %v227_v1 = vrot.slane %v2087_v61, %v2059_v52 }
  0xdb   :  { %v239_v4 = vsel %vm238_vm8, %v223_v63, %v237_v2 }
  0xdc   :  { %v241_v5 = vsel %vm240_vm9, %v227_v1, %v239_v4 }
  0xdd   :  { %v244_v9 = vsel %vm243_vm10, %v241_v5, inf }
  0xde   :  { %245 = vmin.xlane.f32.xlu1 %v244_v9 }
  0xe2   :  { %1374 = vmax.xlane.f32.xlu1 %v1373_v10 }
 0x115   :  { %v1013_v11 = vpop.xlane.xlu1 %1012 }
 0x116   :  { %1743 = vrsqrt.f32 %v1013_v11  ;;  %vm1037_vm11 = vcmp.eq.f32.partialorder %v1013_v11, inf  ;;  %vm1039_vm12 = vcmp.eq.f32.partialorder %v1013_v11, 0.0  ;;  %v1040_v22 = vand.u32 2147483648, %v1013_v11 }
 0x119   :  { %v1025_v12 = vpop.xlane.xlu1 %1024 }
 0x11a   :  { %1745 = vrsqrt.f32 %v1025_v12  ;;  %vm1065_vm13 = vcmp.eq.f32.partialorder %v1025_v12, inf  ;;  %vm1067_vm14 = vcmp.eq.f32.partialorder %v1025_v12, 0.0  ;;  %v1068_v38 = vand.u32 2147483648, %v1025_v12 }
 0x11d   :  { %v1019_v13 = vpop.xlane.xlu1 %1018  ;;  %v1016_v14 = vpop.xlane.xlu0 %1015 }
 0x11e   :  { %1747 = vrsqrt.f32 %v1019_v13  ;;  %vm1051_vm15 = vcmp.eq.f32.partialorder %v1019_v13, inf  ;;  %v1054_v29 = vand.u32 2147483648, %v1019_v13  ;;  %vm1053_vm1 = vcmp.eq.f32.partialorder %v1019_v13, 0.0 }
 0x11f   :  { %1749 = vrsqrt.f32 %v1016_v14  ;;  %vm1044_vm2 = vcmp.eq.f32.partialorder %v1016_v14, inf  ;;  %v1047_v50 = vand.u32 2147483648, %v1016_v14 }
 0x120   :  { %v1744_v27 = vpop.eup %1743 }
 0x121   :  { %v1031_v15 = vpop.xlane.xlu1 %1030  ;;  %v1028_v16 = vpop.xlane.xlu0 %1027  ;;  %v1036_v18 = vmul.f32 %v1744_v27, %v1013_v11 }
 0x122   :  { %1751 = vrsqrt.f32 %v1031_v15  ;;  %vm1079_vm0 = vcmp.eq.f32.partialorder %v1031_v15, inf  ;;  %v1082_v58 = vand.u32 2147483648, %v1031_v15  ;;  %v1075_v2 = vand.u32 2147483648, %v1028_v16 }
 0x123   :  { %1753 = vrsqrt.f32 %v1028_v16  ;;  %v1038_v33 = vsel %vm1037_vm11, %v1013_v11, %v1036_v18  ;;  %vm1046_vm11 = vcmp.eq.f32.partialorder %v1016_v14, 0.0 }
 0x124   :  { %v1746_v20 = vpop.eup %1745  ;;  %v1041_v28 = vsel %vm1039_vm12, %v1040_v22, %v1038_v33  ;;  %vm1072_vm12 = vcmp.eq.f32.partialorder %v1028_v16, inf }
 0x125   :  { %v1022_v32 = vpop.xlane.xlu0 %1021  ;;  %v1064_v23 = vmul.f32 %v1746_v20, %v1025_v12  ;;  %v1091_v47 = vsub.f32 0.0, %v1041_v28 }
 0x126   :  { %1755 = vrsqrt.f32 %v1022_v32 }
 0x127   :  { %v1066_v35 = vsel %vm1065_vm13, %v1025_v12, %v1064_v23  ;;  %vm1081_vm13 = vcmp.eq.f32.partialorder %v1031_v15, 0.0  ;;  %v2108_v10 = vmul.f32 10.0, %v1091_v47  ;;  %v1061_v12 = vand.u32 2147483648, %v1022_v32 }
 0x128   :  { %v1748_v21 = vpop.eup %1747  ;;  %v1069_v63 = vsel %vm1067_vm14, %v1068_v38, %v1066_v35 }
 0x129   :  { %v1750_v7 = vpop.eup %1749  ;;  %v1050_v39 = vmul.f32 %v1748_v21, %v1019_v13  ;;  %v1034_v25 = vpop.xlane.xlu0 %1033 }
 0x12a   :  { %v1043_v31 = vmul.f32 %v1750_v7, %v1016_v14  ;;  %1757 = vrsqrt.f32 %v1034_v25  ;;  %vm1086_vm14 = vcmp.eq.f32.partialorder %v1034_v25, inf }
 0x12b   :  { %v1052_v49 = vsel %vm1051_vm15, %v1019_v13, %v1050_v39  ;;  %vm1074_vm15 = vcmp.eq.f32.partialorder %v1028_v16, 0.0  ;;  %v1089_v39 = vand.u32 2147483648, %v1034_v25 }
 0x12c   :  { %v1752_v34 = vpop.eup %1751  ;;  %v1055_v44 = vsel %vm1053_vm1, %v1054_v29, %v1052_v49  ;;  %v1045_v45 = vsel %vm1044_vm2, %v1016_v14, %v1043_v31  ;;  %v1095_v14 = vsub.f32 0.0, %v1069_v63  ;;  %vm1058_vm1 = vcmp.eq.f32.partialorder %v1022_v32, inf }
 0x12d   :  { %v1754_v46 = vpop.eup %1753  ;;  %v1048_v51 = vsel %vm1046_vm11, %v1047_v50, %v1045_v45  ;;  %v1078_v53 = vmul.f32 %v1752_v34, %v1031_v15  ;;  %v1093_v56 = vsub.f32 0.0, %v1055_v44  ;;  %vm1088_vm2 = vcmp.eq.f32.partialorder %v1034_v25, 0.0 }
 0x12e   :  { %v1092_v57 = vsub.f32 0.0, %v1048_v51  ;;  %v1071_v59 = vmul.f32 %v1754_v46, %v1028_v16  ;;  %v2118_v28 = vmul.f32 10.0, %v1095_v14  ;;  %v298_v14 = vpop.permute.xlu0 %297 }
 0x12f   :  { %v1080_v1 = vsel %vm1079_vm0, %v1031_v15, %v1078_v53  ;;  %v2110_v27 = vmul.f32 10.0, %v1093_v56  ;;  %vm1060_vm0 = vcmp.eq.f32.partialorder %v1022_v32, 0.0 }
 0x130   :  { %v1756_v4 = vpop.eup %1755  ;;  %v2106_v5 = vmul.f32 10.0, %v1092_v57  ;;  %v1073_v9 = vsel %vm1072_vm12, %v1028_v16, %v1071_v59  ;;  %v1083_v13 = vsel %vm1081_vm13, %v1082_v58, %v1080_v1  ;;  %v1119_v16 = vrot.slane %v2108_v10, %v2059_v52 }
 0x131   :  { %v1057_v0 = vmul.f32 %v1756_v4, %v1022_v32  ;;  %v1076_v11 = vsel %vm1074_vm15, %v1075_v2, %v1073_v9  ;;  %v1097_v22 = vsub.f32 0.0, %v1083_v13  ;;  %v1127_v38 = vrot.slane %v2110_v27, %v2059_v52 }
 0x132   :  { %v1123_v18 = vrot.slane %v2106_v5, %v2059_v52  ;;  %v1096_v33 = vsub.f32 0.0, %v1076_v11  ;;  %v1135_v45 = vrot.slane %v2118_v28, %v2059_v52  ;;  %v2147_v2 = vsub.s32 1, %v1866_v3 }
 0x133   :  { %v1059_v20 = vsel %vm1058_vm1, %v1022_v32, %v1057_v0  ;;  %v2125_v34 = vmul.f32 10.0, %v1097_v22  ;;  %v2150_v4 = vsub.s32 3, %v1866_v3  ;;  %v2153_v9 = vsub.s32 2, %v1866_v3 }
 0x134   :  { %v1758_v21 = vpop.eup %1757  ;;  %v1062_v15 = vsel %vm1060_vm0, %v1061_v12, %v1059_v20  ;;  %v2122_v31 = vmul.f32 10.0, %v1096_v33  ;;  %v1148_v49 = vsel %vm228_vm3, %v1123_v18, %v1119_v16  ;;  %v2156_v11 = vsub.s32 5, %v1866_v3 }
 0x135   :  { %v1094_v23 = vsub.f32 0.0, %v1062_v15  ;;  %v1085_v7 = vmul.f32 %v1758_v21, %v1034_v25  ;;  %v1149_v46 = vsel %vm230_vm4, %v1127_v38, %v1148_v49  ;;  %v1143_v53 = vrot.slane %v2125_v34, %v2059_v52 }
 0x136   :  { %v2159_v13 = vsub.s32 4, %v1866_v3  ;;  %v2169_v16 = vsub.s32 7, %v1866_v3 }
 0x137   :  { %v2120_v29 = vmul.f32 10.0, %v1094_v23  ;;  %v1087_v32 = vsel %vm1086_vm14, %v1034_v25, %v1085_v7  ;;  %v1139_v25 = vrot.slane %v2122_v31, %v2059_v52  ;;  %v2175_v7 = vsub.s32 6, %v1866_v3 }
 0x138   :  { %v1090_v50 = vsel %vm1088_vm2, %v1089_v39, %v1087_v32 }
 0x139   :  { %v1098_v35 = vsub.f32 0.0, %v1090_v50  ;;  %v1131_v44 = vrot.slane %v2120_v29, %v2059_v52 }
 0x13b   :  { %v2132_v47 = vmul.f32 10.0, %v1098_v35  ;;  %v1150_v51 = vsel %vm232_vm5, %v1131_v44, %v1149_v46 }
 0x13c   :  { %v1151_v56 = vsel %vm234_vm6, %v1135_v45, %v1150_v51 }
 0x13d   :  { %v1147_v57 = vrot.slane %v2132_v47, %v2059_v52  ;;  %v1152_v58 = vsel %vm236_vm7, %v1139_v25, %v1151_v56 }
 0x13e   :  { %v1153_v59 = vsel %vm238_vm8, %v1143_v53, %v1152_v58 }
 0x13f   :  { %v1154_v63 = vsel %vm240_vm9, %v1147_v57, %v1153_v59 }
 0x140   :  { %v1156_v1 = vsel %vm243_vm10, %v1154_v63, -inf }
 0x141   :  { %1157 = vmax.xlane.f32.xlu1 %v1156_v1 }
 0x16b   :  { %v246_v0 = vpop.xlane.xlu1 %245 }
 0x16c   :  { %v255_v12 = vrot.slane %v246_v0, %v2147_v2  ;;  %v251_v18 = vrot.slane %v246_v0, %v1875_v8  ;;  %v263_v20 = vrot.slane %v246_v0, %v2150_v4  ;;  %v259_v33 = vrot.slane %v246_v0, %v2153_v9 }
 0x16d   :  { %v271_v22 = vrot.slane %v246_v0, %v2156_v11  ;;  %v267_v23 = vrot.slane %v246_v0, %v2159_v13  ;;  %v279_v38 = vrot.slane %v246_v0, %v2169_v16  ;;  %v275_v39 = vrot.slane %v246_v0, %v2175_v7 }
 0x16e   :  { %vm289_vm11 = vcmp.eq.f32.partialorder %v2061_v40, %v255_v12  ;;  %vm288_vm12 = vcmp.eq.f32.partialorder %v2053_v36, %v251_v18  ;;  %vm291_vm13 = vcmp.eq.f32.partialorder %v2063_v41, %v263_v20  ;;  %vm290_vm15 = vcmp.eq.f32.partialorder %v2055_v37, %v259_v33 }
 0x16f   :  { %v300_v21 = vsel %vm289_vm11, %v298_v14, 6  ;;  %v299_v15 = vsel %vm288_vm12, %v298_v14, 6  ;;  %v302_v40 = vsel %vm291_vm13, %v298_v14, 6  ;;  %v301_v36 = vsel %vm290_vm15, %v298_v14, 6  ;;  %v1375_v50 = vpop.xlane.xlu1 %1374 }
 0x170   :  { %311 = vperm.xlu0 %1740, %v300_v21   ;;  %308 = vperm.xlu1 %1739, %v299_v15   ;;  %vm293_vm1 = vcmp.eq.f32.partialorder %v2077_v55, %v271_v22  ;;  %vm292_vm0 = vcmp.eq.f32.partialorder %v2075_v54, %v267_v23  ;;  %vm295_vm14 = vcmp.eq.f32.partialorder %v2087_v61, %v279_v38  ;;  %vm34_vm15 = vcmp.lt.s32.totalorder %v1866_v3, 2 }
 0x171   :  { %v304_v41 = vsel %vm293_vm1, %v298_v14, 6  ;;  %v303_v32 = vsel %vm292_vm0, %v298_v14, 6  ;;  %vm294_vm2 = vcmp.eq.f32.partialorder %v2085_v60, %v275_v39  ;;  %v306_v37 = vsel %vm295_vm14, %v298_v14, 6 }
 0x172   :  { %v305_v49 = vsel %vm294_vm2, %v298_v14, 6  ;;  %v1376_v35 = vsub.f32 %v2099_v6, %v1375_v50  ;;  %vm900_vm14 = vcmask 128000  }
 0x174   :  { %317 = vperm.xlu0 %1740, %v302_v40   ;;  %314 = vperm.xlu1 %1739, %v301_v36   ;;  %v1377_v55 = vmul.f32 1.442695, %v1376_v35 }
 0x176   :  { %1759 = vpow2.f32 %v1377_v55 }
 0x178   :  { %323 = vperm.xlu0 %1740, %v304_v41   ;;  %320 = vperm.xlu1 %1739, %v303_v32  }
 0x17c   :  { %329 = vperm.xlu0 %1740, %v306_v37   ;;  %326 = vperm.xlu1 %1739, %v305_v49  }
 0x180   :  { %v2184_v54 = vpop.eup %1759 }
 0x181   :  { %v1379_v44 = vsel %vm243_vm10, %v2184_v54, 0.0 }
 0x19b   :  { %1380 = vadd.xlane.f32.xlu0 %v1379_v44 }
 0x1ce   :  { %v2188_v45 = vpop.xlane.xlu1 %1157 }
 0x1cf   :  { %v1163_v60 = vrot.slane %v2188_v45, %v1875_v8  ;;  %v1167_v61 = vrot.slane %v2188_v45, %v2147_v2  ;;  %v1171_v46 = vrot.slane %v2188_v45, %v2153_v9  ;;  %v1175_v53 = vrot.slane %v2188_v45, %v2150_v4 }
 0x1d0   :  { %v1183_v58 = vrot.slane %v2188_v45, %v2156_v11 }
 0x1d1   :  { %v1200_v6 = vsub.f32 %v2108_v10, %v1163_v60  ;;  %v1201_v25 = vsub.f32 %v2106_v5, %v1167_v61  ;;  %v1202_v56 = vsub.f32 %v2110_v27, %v1171_v46  ;;  %v1203_v59 = vsub.f32 %v2120_v29, %v1175_v53 }
 0x1d2   :  { %v1205_v1 = vsub.f32 %v2122_v31, %v1183_v58  ;;  %v1179_v46 = vrot.slane %v2188_v45, %v2159_v13  ;;  %v1187_v53 = vrot.slane %v2188_v45, %v2175_v7  ;;  %v1191_v58 = vrot.slane %v2188_v45, %v2169_v16 }
 0x1d3   :  { %v1208_v51 = vmul.f32 1.442695, %v1200_v6  ;;  %v1210_v57 = vmul.f32 1.442695, %v1201_v25  ;;  %v1212_v63 = vmul.f32 1.442695, %v1202_v56 }
 0x1d4   :  { %v1214_v10 = vmul.f32 1.442695, %v1203_v59  ;;  %v1218_v0 = vmul.f32 1.442695, %v1205_v1  ;;  %v1204_v56 = vsub.f32 %v2118_v28, %v1179_v46  ;;  %v1206_v59 = vsub.f32 %v2125_v34, %v1187_v53 }
 0x1d5   :  { %1761 = vpow2.f32 %v1208_v51  ;;  %v1207_v1 = vsub.f32 %v2132_v47, %v1191_v58 }
 0x1d6   :  { %1763 = vpow2.f32 %v1210_v57 }
 0x1d7   :  { %1765 = vpow2.f32 %v1212_v63  ;;  %v1216_v63 = vmul.f32 1.442695, %v1204_v56 }
 0x1d8   :  { %1767 = vpow2.f32 %v1214_v10  ;;  %v1220_v10 = vmul.f32 1.442695, %v1206_v59 }
 0x1d9   :  { %1769 = vpow2.f32 %v1218_v0  ;;  %v1222_v0 = vmul.f32 1.442695, %v1207_v1 }
 0x1da   :  { %1771 = vpow2.f32 %v1216_v63 }
 0x1db   :  { %1773 = vpow2.f32 %v1220_v10 }
 0x1dc   :  { %1775 = vpow2.f32 %v1222_v0 }
 0x1df   :  { %v2205_v5 = vpop.eup %1761 }
 0x1e0   :  { %1233 = vperm.xlu0 %1740, %v2205_v5   ;;  %v2208_v27 = vpop.eup %1763 }
 0x1e1   :  { %v2211_v14 = vpop.eup %1765 }
 0x1e2   :  { %v2214_v29 = vpop.eup %1767 }
 0x1e3   :  { %v2217_v31 = vpop.eup %1769 }
 0x1e4   :  { %1236 = vperm.xlu0 %1740, %v2208_v27  }
 0x1e8   :  { %1239 = vperm.xlu0 %1740, %v2211_v14  }
 0x1ec   :  { %1242 = vperm.xlu0 %1740, %v2214_v29  }
 0x1ef   :  { %v312_v12 = vpop.permute.xlu0 %311  ;;  %v309_v18 = vpop.permute.xlu1 %308 }
 0x1f0   :  { %1248 = vperm.xlu0 %1740, %v2217_v31   ;;  %v338_v20 = vrot.slane %v312_v12, %v2059_v52  ;;  %v334_v33 = vrot.slane %v309_v18, %v2059_v52  ;;  %v2245_v12 = vpop.eup %1771 }
 0x1f1   :  { %v2248_v28 = vpop.eup %1773 }
 0x1f2   :  { %v363_v23 = vsel %vm228_vm3, %v338_v20, %v334_v33  ;;  %v2251_v18 = vpop.eup %1775 }
 0x1f3   :  { %v318_v21 = vpop.permute.xlu0 %317  ;;  %v315_v15 = vpop.permute.xlu1 %314 }
 0x1f4   :  { %v342_v22 = vrot.slane %v315_v15, %v2059_v52  ;;  %v346_v40 = vrot.slane %v318_v21, %v2059_v52  ;;  %v2258_v15 = vld [vmem:[%s2725_s2] sm:$0xff] }
 0x1f6   :  { %v364_v36 = vsel %vm230_vm4, %v342_v22, %v363_v23  ;;  %v388_v22 = vsel %vm243_vm10, %v2258_v15, -inf }
 0x1f7   :  { %v324_v38 = vpop.permute.xlu0 %323  ;;  %v321_v39 = vpop.permute.xlu1 %320  ;;  %v365_v37 = vsel %vm232_vm5, %v346_v40, %v364_v36 }
 0x1f8   :  { %v350_v41 = vrot.slane %v321_v39, %v2059_v52  ;;  %v354_v32 = vrot.slane %v324_v38, %v2059_v52 }
 0x1fa   :  { %v366_v49 = vsel %vm234_vm6, %v350_v41, %v365_v37 }
 0x1fb   :  { %v330_v50 = vpop.permute.xlu0 %329  ;;  %v327_v35 = vpop.permute.xlu1 %326  ;;  %v367_v60 = vsel %vm236_vm7, %v354_v32, %v366_v49 }
 0x1fc   :  { %v362_v55 = vrot.slane %v330_v50, %v2059_v52  ;;  %v358_v44 = vrot.slane %v327_v35, %v2059_v52 }
 0x1fe   :  { %v368_v61 = vsel %vm238_vm8, %v358_v44, %v367_v60 }
 0x1ff   :  { %v369_v6 = vsel %vm240_vm9, %v362_v55, %v368_v61 }
 0x200   :  { %v370_v25 = vsel %vm243_vm10, %v369_v6, 2147483647 }
 0x201   :  { %v372_v51 = vshra.s32 %v370_v25, 16  ;;  %v371_v46 = vand.u32 65535, %v370_v25 }
 0x203   :  { %v374_v57 = vcvt.s32.f32 %v372_v51  ;;  %v373_v51 = vcvt.s32.f32 %v371_v46 }
 0x205   :  { %375 = vmin.xlane.f32.xlu1 %v374_v57 }
 0x216   :  { %1245 = vperm.xlu1 %1739, %v2245_v12  }
 0x21a   :  { %1251 = vperm.xlu1 %1739, %v2248_v28  }
 0x21e   :  { %1254 = vperm.xlu1 %1739, %v2251_v18  }
 0x228   :  { %v1381_v34 = vpop.xlane.xlu0 %1380 }
 0x229   :  { %1777 = vrcp.f32 %v1381_v34 }
 0x233   :  { %v1778_v47 = vpop.eup %1777 }
 0x234   :  { %v1383_v45 = vmul.f32 %v1778_v47, %v2184_v54 }
 0x236   :  { %v1384_v20 = vmax.f32 %v1383_v45, 0.001 }
 0x238   :  { %v1385_v33 = vmin.f32 %v1384_v20, 0.999 }
 0x23a   :  { %1779 = vlog2.f32 %v1385_v33  ;;  %v1389_v21 = vsub.f32 1.0, %v1385_v33 }
 0x23c   :  { %1781 = vlog2.f32 %v1389_v21 }
 0x242   :  { %389 = vmax.xlane.f32.xlu1 %v388_v22 }
 0x244   :  { %v1780_v23 = vpop.eup %1779 }
 0x245   :  { %v1387_v40 = vmul.f32 0.6931472, %v1780_v23 }
 0x246   :  { %v1782_v38 = vpop.eup %1781 }
 0x247   :  { %v2262_v36 = vmax.f32 %v1387_v40, -100.0  ;;  %v1391_v39 = vmul.f32 0.6931472, %v1782_v38 }
 0x249   :  { %v1404_v54 = vrot.slane %v2262_v36, %v2147_v2  ;;  %v1392_v41 = vmax.f32 %v1391_v39, -100.0  ;;  %v1397_v32 = vrot.slane %v2262_v36, %v1875_v8 }
 0x24b   :  { %1406 = vbcast.lane.b32.xlu0 %v1404_v54, 256  ;;  %v1478_v37 = vrot.slane %v1392_v41, %v1875_v8  ;;  %v1485_v49 = vrot.slane %v1392_v41, %v2147_v2  ;;  %v1492_v50 = vrot.slane %v1392_v41, %v2153_v9  ;;  %v1499_v35 = vrot.slane %v1392_v41, %v2150_v4 }
 0x24c   :  { %v1506_v55 = vrot.slane %v1392_v41, %v2159_v13 }
 0x253   :  { %1399 = vbcast.lane.b32.xlu1 %v1397_v32, 256  ;;  %v1411_v32 = vrot.slane %v2262_v36, %v2153_v9 }
 0x257   :  { %1480 = vbcast.lane.b32.xlu1 %v1478_v37, 256  ;;  %v1418_v37 = vrot.slane %v2262_v36, %v2150_v4 }
 0x25b   :  { %1487 = vbcast.lane.b32.xlu1 %v1485_v49, 256  ;;  %v1425_v49 = vrot.slane %v2262_v36, %v2159_v13 }
 0x25f   :  { %1494 = vbcast.lane.b32.xlu1 %v1492_v50, 256  ;;  %v1234_v44 = vpop.permute.xlu0 %1233  ;;  %v1513_v50 = vrot.slane %v1392_v41, %v2156_v11 }
 0x260   :  { %v1259_v1 = vrot.slane %v1234_v44, %v2059_v52  ;;  %v1439_v44 = vrot.slane %v2262_v36, %v2175_v7 }
 0x263   :  { %1501 = vbcast.lane.b32.xlu1 %v1499_v35, 256  ;;  %v1237_v60 = vpop.permute.xlu0 %1236  ;;  %v1432_v35 = vrot.slane %v2262_v36, %v2156_v11 }
 0x264   :  { %v1263_v58 = vrot.slane %v1237_v60, %v2059_v52  ;;  %v1527_v60 = vrot.slane %v1392_v41, %v2169_v16 }
 0x266   :  { %v1288_v34 = vsel %vm228_vm3, %v1263_v58, %v1259_v1 }
 0x267   :  { %1508 = vbcast.lane.b32.xlu1 %v1506_v55, 256  ;;  %v1240_v61 = vpop.permute.xlu0 %1239  ;;  %v1520_v55 = vrot.slane %v1392_v41, %v2175_v7 }
 0x268   :  { %v1267_v59 = vrot.slane %v1240_v61, %v2059_v52  ;;  %v1446_v61 = vrot.slane %v2262_v36, %v2169_v16 }
 0x26a   :  { %v1289_v25 = vsel %vm230_vm4, %v1267_v59, %v1288_v34 }
 0x26b   :  { %v1243_v53 = vpop.permute.xlu0 %1242 }
 0x26c   :  { %v1271_v10 = vrot.slane %v1243_v53, %v2059_v52 }
 0x26e   :  { %v1290_v45 = vsel %vm232_vm5, %v1271_v10, %v1289_v25 }
 0x26f   :  { %v1249_v47 = vpop.permute.xlu0 %1248 }
 0x270   :  { %v1279_v21 = vrot.slane %v1249_v47, %v2059_v52 }
 0x292   :  { %v376_v6 = vpop.xlane.xlu1 %375 }
 0x293   :  { %vm377_vm11 = vcmp.eq.f32.partialorder %v374_v57, %v376_v6  ;;  %v382_v36 = vcvt.f32.s32 %v376_v6 }
 0x294   :  { %v378_v56 = vsel %vm377_vm11, %v373_v51, inf }
 0x295   :  { %379 = vmin.xlane.f32.xlu0 %v378_v56 }
 0x296   :  { %v1246_v63 = vpop.permute.xlu1 %1245 }
 0x297   :  { %v1275_v0 = vrot.slane %v1246_v63, %v2059_v52 }
 0x299   :  { %v1291_v20 = vsel %vm234_vm6, %v1275_v0, %v1290_v45  ;;  %v383_v0 = vshll.u32 %v382_v36, 16 }
 0x29a   :  { %v1252_v57 = vpop.permute.xlu1 %1251  ;;  %v1292_v40 = vsel %vm236_vm7, %v1279_v21, %v1291_v20 }
 0x29b   :  { %v1283_v33 = vrot.slane %v1252_v57, %v2059_v52  ;;  %v1819_v57 = vmov 0.0  }
 0x29d   :  { %v1293_v54 = vsel %vm238_vm8, %v1283_v33, %v1292_v40 }
 0x29e   :  { %v1255_v22 = vpop.permute.xlu1 %1254 }
 0x29f   :  { %v1287_v23 = vrot.slane %v1255_v22, %v2059_v52  ;;  %v737_v22 = vld [vmem:[%s2726_s4] sm:$0x3f] }
 0x2a1   :  { %v1294_v38 = vsel %vm240_vm9, %v1287_v23, %v1293_v54 }
 0x2a2   :  { %v1296_v39 = vsel %vm243_vm10, %v1294_v38, 0.0 }
 0x2a3   :  { %1297 = vadd.xlane.f32.xlu1 %v1296_v39  ;;  %v836_v39 = vsub.f32 %v737_v22, %v1888_v17 }
 0x2a5   :  { %v844_v17 = vand.u32 2147483647, %v836_v39  ;;  %v860_v36 = vmul.f32 0.5, %v836_v39 }
 0x2a7   :  { %vm2376_vm13 = vcmp.lt.f32.partialorder %v844_v17, 0.04 }
 0x2ab   :  { %1413 = vbcast.lane.b32.xlu0 %v1411_v32, 256 }
 0x2af   :  { %1420 = vbcast.lane.b32.xlu0 %v1418_v37, 256 }
 0x2b3   :  { %1427 = vbcast.lane.b32.xlu0 %v1425_v49, 256 }
 0x2b4   :  { %1515 = vbcast.lane.b32.xlu1 %v1513_v50, 256  ;;  %v739_v50 = vld [vmem:[%s2726_s4 + $0x10] sm:$0x3f] }
 0x2b7   :  { %1434 = vbcast.lane.b32.xlu0 %v1432_v35, 256 }
 0x2b8   :  { %1522 = vbcast.lane.b32.xlu1 %v1520_v55, 256 }
 0x2bb   :  { %1441 = vbcast.lane.b32.xlu0 %v1439_v44, 256  ;;  %v741_v44 = vld [vmem:[%s2726_s4 + $0x20] sm:$0x3f] }
 0x2bc   :  { %1529 = vbcast.lane.b32.xlu1 %v1527_v60, 256 }
 0x2bd   :  { %v2315_v1 = vpop.permute.xlu0 %1406 }
 0x2bf   :  { %1448 = vbcast.lane.b32.xlu0 %v1446_v61, 256  ;;  %v2357_v61 = vsub.f32 %v739_v50, %v1900_v24 }
 0x2cf   :  { %v390_v46 = vpop.xlane.xlu1 %389 }
 0x2d0   :  { %v391_v51 = vsub.f32 %v2258_v15, %v390_v46  ;;  %v2360_v46 = vsub.f32 %v741_v44, %v1891_v19  ;;  %v738_v19 = vld [vmem:[%s2726_s4 + $0x8] sm:$0x3f] }
 0x2d2   :  { %v392_v53 = vmul.f32 1.442695, %v391_v51  ;;  %v864_v24 = vmul.f32 0.5, %v2360_v46 }
 0x2d3   :  { %v2309_v59 = vpop.permute.xlu1 %1399 }
 0x2d4   :  { %1783 = vpow2.f32 %v392_v53 }
 0x2d7   :  { %v2311_v41 = vpop.permute.xlu1 %1480 }
 0x2db   :  { %v2313_v63 = vpop.permute.xlu1 %1487 }
 0x2de   :  { %v2305_v56 = vpop.eup %1783 }
 0x2df   :  { %v394_v58 = vsel %vm243_vm10, %v2305_v56, 0.0  ;;  %v2317_v10 = vpop.permute.xlu1 %1494 }
 0x2e0   :  { %395 = vadd.xlane.f32.xlu0 %v394_v58 }
 0x2e3   :  { %v2319_v47 = vpop.permute.xlu1 %1501 }
 0x2e7   :  { %v2327_v33 = vpop.permute.xlu1 %1508 }
 0x322   :  { %v380_v15 = vpop.xlane.xlu0 %379 }
 0x323   :  { %v381_v34 = vcvt.f32.s32 %v380_v15  ;;  %v1719_v15 = vadd.f32 -0.02, %v844_v17 }
 0x325   :  { %v384_v25 = vadd.s32 %v383_v0, %v381_v34  ;;  %v862_v0 = vmul.f32 0.5, %v2357_v61  ;;  %v2730_v34 = vand.u32 2147483647, %v2357_v61 }
 0x326   :  { %v2329_v6 = vpop.permute.xlu0 %1413 }
 0x327   :  { %vm385_vm12 = vcmp.eq.s32.totalorder %v2013_v62, %v384_v25  ;;  %v742_v25 = vld [vmem:[%s2726_s4 + $0x28] sm:$0x3f]  ;;  %v2392_v50 = vmul.f32 %v862_v0, %v2357_v61  ;;  %v1721_v44 = vadd.f32 -0.02, %v2730_v34 }
 0x328   :  { %v2323_v45 = vsel %vm385_vm12, 1.0, %v1819_v57 }
 0x329   :  { %v425_v20 = vrot.slane %v2323_v45, %v1875_v8  ;;  %v432_v21 = vrot.slane %v2323_v45, %v2147_v2  ;;  %v439_v38 = vrot.slane %v2323_v45, %v2153_v9  ;;  %v446_v55 = vrot.slane %v2323_v45, %v2150_v4 }
 0x32a   :  { %v2343_v37 = vpop.permute.xlu0 %1420  ;;  %v453_v58 = vrot.slane %v2323_v45, %v2159_v13 }
 0x32b   :  { %427 = vbcast.lane.b32.xlu1 %v425_v20, 256 }
 0x32e   :  { %v2362_v51 = vpop.permute.xlu0 %1427 }
 0x32f   :  { %434 = vbcast.lane.b32.xlu1 %v432_v21, 256 }
 0x330   :  { %v1298_v62 = vpop.xlane.xlu1 %1297 }
 0x331   :  { %v1303_v23 = vrot.slane %v1298_v62, %v1875_v8  ;;  %v1307_v40 = vrot.slane %v1298_v62, %v2147_v2  ;;  %v1311_v54 = vrot.slane %v1298_v62, %v2153_v9  ;;  %v1315_v32 = vrot.slane %v1298_v62, %v2150_v4 }
 0x332   :  { %v1323_v49 = vrot.slane %v1298_v62, %v2156_v11  ;;  %v1327_v35 = vrot.slane %v1298_v62, %v2175_v7  ;;  %v1331_v60 = vrot.slane %v1298_v62, %v2169_v16  ;;  %v1319_v53 = vrot.slane %v1298_v62, %v2159_v13  ;;  %v2403_v17 = vpop.permute.xlu0 %1434 }
 0x333   :  { %1785 = vrcp.f32 %v1303_v23  ;;  %441 = vbcast.lane.b32.xlu1 %v439_v38, 256  ;;  %v460_v62 = vrot.slane %v2323_v45, %v2156_v11  ;;  %v2388_v38 = vsub.f32 %v738_v19, %v1913_v30 }
 0x334   :  { %1787 = vrcp.f32 %v1307_v40  ;;  %v2383_v40 = vmul.f32 %v860_v36, %v836_v39  ;;  %v740_v39 = vld [vmem:[%s2726_s4 + $0x18] sm:$0x3f]  ;;  %v467_v36 = vrot.slane %v2323_v45, %v2175_v7 }
 0x335   :  { %1789 = vrcp.f32 %v1311_v54  ;;  %v2385_v54 = vmul.f32 0.04, %v1719_v15 }
 0x336   :  { %1791 = vrcp.f32 %v1315_v32 }
 0x337   :  { %448 = vbcast.lane.b32.xlu1 %v446_v55, 256  ;;  %1793 = vrcp.f32 %v1323_v49  ;;  %v2398_v55 = vsub.f32 %v742_v25, %v1904_v26 }
 0x338   :  { %1795 = vrcp.f32 %v1327_v35  ;;  %v2395_v35 = vmul.f32 %v864_v24, %v2360_v46  ;;  %v2433_v24 = vpop.permute.xlu0 %1441 }
 0x339   :  { %1797 = vrcp.f32 %v1331_v60  ;;  %v2409_v60 = vpop.permute.xlu1 %1515 }
 0x33a   :  { %1799 = vrcp.f32 %v1319_v53 }
 0x33b   :  { %455 = vbcast.lane.b32.xlu1 %v453_v58, 256  ;;  %v2413_v58 = vmul.f32 0.5, %v2398_v55 }
 0x33d   :  { %v1786_v20 = vpop.eup %1785  ;;  %v1523_v19 = vpop.permute.xlu1 %1522 }
 0x33e   :  { %v1788_v23 = vpop.eup %1787  ;;  %v1341_v32 = vmul.f32 %v1786_v20, %v2205_v5 }
 0x33f   :  { %v1790_v49 = vpop.eup %1789  ;;  %462 = vbcast.lane.b32.xlu1 %v460_v62, 256  ;;  %v1343_v30 = vmul.f32 %v1788_v23, %v2208_v27  ;;  %v2424_v62 = vsub.f32 %v740_v39, %v1938_v42  ;;  %v2427_v23 = vsel %vm34_vm15, 1.0, %v1819_v57 }
 0x340   :  { %v1792_v5 = vpop.eup %1791  ;;  %v1356_v53 = vmax.f32 %v1341_v32, 0.001  ;;  %v1345_v26 = vmul.f32 %v1790_v49, %v2211_v14 }
 0x341   :  { %v1357_v15 = vmax.f32 %v1343_v30, 0.001  ;;  %v1347_v27 = vmul.f32 %v1792_v5, %v2214_v29  ;;  %v1794_v0 = vpop.eup %1793  ;;  %v474_v5 = vrot.slane %v2323_v45, %v2169_v16 }
 0x342   :  { %v1364_v25 = vmin.f32 %v1356_v53, 0.999  ;;  %v1358_v20 = vmax.f32 %v1345_v26, 0.001  ;;  %v1796_v14 = vpop.eup %1795  ;;  %v1351_v32 = vmul.f32 %v1794_v0, %v2217_v31 }
 0x343   :  { %469 = vbcast.lane.b32.xlu1 %v467_v36, 256  ;;  %v1365_v29 = vmin.f32 %v1357_v15, 0.999  ;;  %v1798_v49 = vpop.eup %1797  ;;  %v1353_v30 = vmul.f32 %v1796_v14, %v2248_v28  ;;  %v1359_v57 = vmax.f32 %v1347_v27, 0.001 }
 0x344   :  { %v1466_v22 = vsub.f32 1.0, %v1364_v25  ;;  %v1366_v53 = vmin.f32 %v1358_v20, 0.999  ;;  %v1361_v26 = vmax.f32 %v1351_v32, 0.001  ;;  %v1355_v42 = vmul.f32 %v1798_v49, %v2251_v18  ;;  %v1800_v28 = vpop.eup %1799 }
 0x345   :  { %v1467_v39 = vsub.f32 1.0, %v1365_v29  ;;  %v1362_v34 = vmax.f32 %v1353_v30, 0.001  ;;  %v1458_v31 = vmul.f32 %v2309_v59, %v1364_v25  ;;  %v1567_v20 = vrot.slane %v2427_v23, %v1875_v8 }
 0x346   :  { %v1539_v36 = vmul.f32 %v2311_v41, %v1466_v22  ;;  %v1468_v15 = vsub.f32 1.0, %v1366_v53  ;;  %v1363_v0 = vmax.f32 %v1355_v42, 0.001  ;;  %v1459_v14 = vmul.f32 %v2315_v1, %v1365_v29 }
 0x347   :  { %476 = vbcast.lane.b32.xlu1 %v474_v5, 256  ;;  %v1540_v32 = vmul.f32 %v2313_v63, %v1467_v39  ;;  %v1369_v18 = vmin.f32 %v1361_v26, 0.999  ;;  %v1460_v27 = vmul.f32 %v2329_v6, %v1366_v53  ;;  %v1571_v41 = vrot.slane %v2427_v23, %v2147_v2  ;;  %v1449_v26 = vpop.permute.xlu0 %1448 }
 0x348   :  { %v1547_v49 = vadd.f32 %v1539_v36, %v1458_v31  ;;  %v1541_v30 = vmul.f32 %v2317_v10, %v1468_v15  ;;  %v1371_v59 = vmin.f32 %v1363_v0, 0.999  ;;  %v1367_v22 = vmin.f32 %v1359_v57, 0.999  ;;  %v1530_v31 = vpop.permute.xlu1 %1529 }
 0x349   :  { %v1548_v25 = vadd.f32 %v1540_v32, %v1459_v14  ;;  %v1370_v5 = vmin.f32 %v1362_v34, 0.999  ;;  %v1349_v8 = vmul.f32 %v1800_v28, %v2245_v12  ;;  %v2447_v1 = vmul.f32 0.04, %v1721_v44 }
 0x34a   :  { %v1555_v42 = vsub.f32 0.0, %v1547_v49  ;;  %v1549_v3 = vadd.f32 %v1541_v30, %v1460_v27  ;;  %v2738_v63 = vand.u32 2147483647, %v2388_v38  ;;  %v1473_v6 = vsub.f32 1.0, %v1371_v59  ;;  %v46_v30 = vld [vmem:[%s2727_s1 + $0x8] sm:$0x3f] }
 0x34b   :  { %v1556_v53 = vsub.f32 0.0, %v1548_v25  ;;  %v1471_v10 = vsub.f32 1.0, %v1369_v18  ;;  %v1465_v39 = vmul.f32 %v1449_v26, %v1371_v59  ;;  %v1575_v2 = vrot.slane %v2427_v23, %v2153_v9 }
 0x34c   :  { %v1720_v29 = vadd.f32 -0.02, %v2738_v63  ;;  %v1604_v36 = vmul.f32 %v1567_v20, %v1555_v42  ;;  %v1546_v34 = vmul.f32 %v1530_v31, %v1473_v6  ;;  %v1557_v15 = vsub.f32 0.0, %v1549_v3  ;;  %v743_v42 = vld [vmem:[%s2726_s4 + $0x30] sm:$0x3f] }
 0x34d   :  { %v1605_v57 = vmul.f32 %v1571_v41, %v1556_v53  ;;  %v1469_v0 = vsub.f32 1.0, %v1367_v22  ;;  %v2739_v12 = vand.u32 2147483647, %v2357_v61  ;;  %v861_v28 = vmul.f32 0.5, %v2388_v38 }
 0x34e   :  { %v847_v14 = vand.u32 2147483647, %v2424_v62  ;;  %v1472_v32 = vsub.f32 1.0, %v1370_v5  ;;  %1621 = vperm.xlu0 %1740, %v1604_v36   ;;  %v1360_v20 = vmax.f32 %v1349_v8, 0.001  ;;  %v1554_v49 = vadd.f32 %v1546_v34, %v1465_v39 }
 0x34f   :  { %vm2455_vm1 = vcmp.lt.f32.partialorder %v2739_v12, 0.04  ;;  %1624 = vperm.xlu1 %1739, %v1605_v57   ;;  %v1595_v9 = vrot.slane %v2427_v23, %v2169_v16  ;;  %v1461_v3 = vmul.f32 %v2343_v37, %v1367_v22  ;;  %v1542_v61 = vmul.f32 %v2319_v47, %v1469_v0 }
 0x350   :  { %v2742_v27 = vmov %v2738_v63  ;;  %v863_v59 = vmul.f32 0.5, %v2424_v62  ;;  %v1544_v25 = vmul.f32 %v2409_v60, %v1471_v10  ;;  %v1368_v41 = vmin.f32 %v1360_v20, 0.999  ;;  %v744_v63 = vld [vmem:[%s2726_s4 + $0x38] sm:$0x3f] }
 0x351   :  { %vm2467_vm0 = vcmp.lt.f32.partialorder %v2742_v27, 0.04  ;;  %v1562_v16 = vsub.f32 0.0, %v1554_v49  ;;  %v1606_v8 = vmul.f32 %v1575_v2, %v1557_v15  ;;  %v1550_v37 = vadd.f32 %v1542_v61, %v1461_v3 }
 0x352   :  { %v1579_v47 = vrot.slane %v2427_v23, %v2150_v4  ;;  %v1722_v22 = vadd.f32 -0.02, %v847_v14  ;;  %v1463_v26 = vmul.f32 %v2403_v17, %v1369_v18  ;;  %v1545_v6 = vmul.f32 %v1523_v19, %v1472_v32 }
 0x353   :  { %v1470_v60 = vsub.f32 1.0, %v1368_v41  ;;  %v869_v53 = vmul.f32 %v861_v28, %v2388_v38  ;;  %v885_v10 = vmul.f32 0.04, %v1720_v29  ;;  %1627 = vperm.xlu1 %1739, %v1606_v8   ;;  %v1611_v39 = vmul.f32 %v1595_v9, %v1562_v16 }
 0x354   :  { %v1558_v31 = vsub.f32 0.0, %v1550_v37  ;;  %v1552_v36 = vadd.f32 %v1544_v25, %v1463_v26  ;;  %v1464_v2 = vmul.f32 %v2433_v24, %v1370_v5  ;;  %v1462_v4 = vmul.f32 %v2362_v51, %v1368_v41 }
 0x355   :  { %v1543_v34 = vmul.f32 %v2327_v33, %v1470_v60  ;;  %v871_v57 = vmul.f32 %v863_v59, %v2424_v62  ;;  %v842_v15 = vsub.f32 %v743_v42, %v1941_v43  ;;  %v843_v17 = vsub.f32 %v744_v63, %v1951_v48  ;;  %1642 = vperm.xlu0 %1740, %v1611_v39  }
 0x356   :  { %v1607_v19 = vmul.f32 %v1579_v47, %v1558_v31  ;;  %v887_v38 = vmul.f32 0.04, %v1722_v22  ;;  %v1553_v18 = vadd.f32 %v1545_v6, %v1464_v2  ;;  %v1583_v0 = vrot.slane %v2427_v23, %v2159_v13 }
 0x357   :  { %v1551_v29 = vadd.f32 %v1543_v34, %v1462_v4  ;;  %v1587_v51 = vrot.slane %v2427_v23, %v2156_v11  ;;  %v1591_v33 = vrot.slane %v2427_v23, %v2175_v7  ;;  %v893_v43 = vsel %vm2467_vm0, %v869_v53, %v885_v10 }
 0x358   :  { %1630 = vperm.xlu1 %1739, %v1607_v19   ;;  %v1560_v48 = vsub.f32 0.0, %v1552_v36  ;;  %v2745_v62 = vsel %vm2376_vm13, %v2383_v40, %v2385_v54  ;;  %v902_v5 = vsel %vm900_vm14, %v893_v43, 0.0  ;;  %v849_v11 = vand.u32 2147483647, %v2398_v55 }
 0x359   :  { %v1559_v24 = vsub.f32 0.0, %v1551_v29  ;;  %v901_v13 = vsel %vm900_vm14, %v2745_v62, 0.0  ;;  %v2746_v12 = vand.u32 2147483647, %v2360_v46  ;;  %v894_v28 = vsel %vm2455_vm1, %v2392_v50, %v2447_v1 }
 0x35a   :  { %v903_v32 = vadd.f32 %v902_v5, %v901_v13  ;;  %v1561_v20 = vsub.f32 0.0, %v1553_v18  ;;  %vm855_vm2 = vcmp.lt.f32.partialorder %v847_v14, 0.04  ;;  %v904_v40 = vsel %vm900_vm14, %v894_v28, 0.0 }
 0x35b   :  { %v1723_v7 = vadd.f32 -0.02, %v2746_v12  ;;  %v1608_v21 = vmul.f32 %v1583_v0, %v1559_v24  ;;  %v850_v54 = vand.u32 2147483647, %v842_v15  ;;  %v1724_v49 = vadd.f32 -0.02, %v849_v11 }
 0x35c   :  { %v895_v3 = vsel %vm855_vm2, %v871_v57, %v887_v38  ;;  %v1609_v61 = vmul.f32 %v1587_v51, %v1560_v48  ;;  %v2747_v27 = vmov %v2746_v12  ;;  %v905_v44 = vadd.f32 %v904_v40, %v903_v32 }
 0x35d   :  { %v888_v9 = vmul.f32 0.04, %v1723_v7  ;;  %1633 = vperm.xlu1 %1739, %v1608_v21   ;;  %vm2514_vm11 = vcmp.lt.f32.partialorder %v2747_v27, 0.04  ;;  %v906_v50 = vsel %vm900_vm14, %v895_v3, 0.0  ;;  %v866_v59 = vmul.f32 0.5, %v842_v15 }
 0x35e   :  { %v851_v1 = vand.u32 2147483647, %v843_v17  ;;  %v873_v14 = vmul.f32 %v2413_v58, %v2398_v55  ;;  %v1725_v25 = vadd.f32 -0.02, %v850_v54  ;;  %vm2521_vm12 = vcmp.lt.f32.partialorder %v849_v11, 0.04 }
 0x35f   :  { %vm2525_vm13 = vcmp.lt.f32.partialorder %v850_v54, 0.04  ;;  %v867_v46 = vmul.f32 0.5, %v843_v17  ;;  %v896_v16 = vsel %vm2514_vm11, %v2395_v35, %v888_v9  ;;  %v874_v37 = vmul.f32 %v866_v59, %v842_v15  ;;  %v1807_v7 = vld [vmem:[%s2723_s0] sm:$0x3f] }
 0x360   :  { %vm2532_vm15 = vcmp.lt.f32.partialorder %v851_v1, 0.04  ;;  %v1726_v55 = vadd.f32 -0.02, %v851_v1  ;;  %v889_v58 = vmul.f32 0.04, %v1724_v49  ;;  %v907_v63 = vadd.f32 %v906_v50, %v905_v44 }
 0x361   :  { %1636 = vperm.xlu1 %1739, %v1609_v61   ;;  %v875_v47 = vmul.f32 %v867_v46, %v843_v17  ;;  %v890_v22 = vmul.f32 0.04, %v1725_v25  ;;  %v908_v26 = vsel %vm900_vm14, %v896_v16, 0.0  ;;  %v1610_v53 = vmul.f32 %v1591_v33, %v1561_v20  ;;  %v45_v20 = vld [vmem:[%s2727_s1] sm:$0x3f] }
 0x362   :  { %v891_v6 = vmul.f32 0.04, %v1726_v55  ;;  %v897_v60 = vsel %vm2521_vm12, %v873_v14, %v889_v58  ;;  %v909_v10 = vadd.f32 %v908_v26, %v907_v63  ;;  %v407_v48 = vsub.f32 1.0, %v2323_v45  ;;  %v1809_v49 = vld [vmem:[%s2723_s0 + $0x10] sm:$0x3f] }
 0x363   :  { %v898_v35 = vsel %vm2525_vm13, %v874_v37, %v890_v22  ;;  %v910_v39 = vsel %vm900_vm14, %v897_v60, 0.0  ;;  %vm2756_vm1 = vcmask 13312   ;;  %v1810_v59 = vld [vmem:[%s2723_s0 + $0x18] sm:$0x3f]  ;;  %v47_v55 = vld [vmem:[%s2727_s1 + $0x10] sm:$0x3f] }
 0x364   :  { %v899_v31 = vsel %vm2532_vm15, %v875_v47, %v891_v6  ;;  %v912_v36 = vsel %vm900_vm14, %v898_v35, 0.0  ;;  %v911_v2 = vadd.f32 %v910_v39, %v909_v10  ;;  %vm2757_vm0 = vmmov %vm2756_vm1  ;;  %v1811_v47 = vld [vmem:[%s2723_s0 + $0x20] sm:$0x3f]  ;;  %v48_v10 = vld [vmem:[%s2727_s1 + $0x18] sm:$0x3f] }
 0x365   :  { %1639 = vperm.xlu1 %1739, %v1610_v53   ;;  %v914_v4 = vsel %vm900_vm14, %v899_v31, 0.0  ;;  %vm2758_vm14 = vmmov %vm2757_vm0 }
 0x366   :  { %v913_v34 = vadd.f32 %v912_v36, %v911_v2  ;;  %vm2759_vm2 = vmmov %vm2757_vm0 }
 0x367   :  { %vm2760_vm11 = vmmov %vm2757_vm0 }
 0x368   :  { %v915_v57 = vadd.f32 %v914_v4, %v913_v34  ;;  %vm2761_vm12 = vmmov %vm2757_vm0  ;;  %v49_v4 = vld [vmem:[%s2727_s1 + $0x20] sm:$0x3f]  ;;  %v1812_v34 = vld [vmem:[%s2723_s0 + $0x28] sm:$0x3f] }
 0x369   :  { %vm2762_vm13 = vmmov %vm2757_vm0 }
 0x36a   :  { %vm2763_vm15 = vmmov %vm2757_vm0 }
 0x36d   :  { %v396_v15 = vpop.xlane.xlu0 %395 }
 0x36e   :  { %1801 = vrcp.f32 %v396_v15 }
 0x374   :  { %916 = vadd.xlane.f32.xlu0 %v915_v57 }
 0x378   :  { %v1802_v17 = vpop.eup %1801 }
 0x379   :  { %v398_v19 = vmul.f32 %v1802_v17, %v2305_v56 }
 0x37b   :  { %1803 = vlog2.f32 %v398_v19  ;;  %v402_v38 = vsub.f32 1.0, %v398_v19 }
 0x37d   :  { %1805 = vlog2.f32 %v402_v38  ;;  %v50_v38 = vld [vmem:[%s2727_s1 + $0x28] sm:$0x3f] }
 0x385   :  { %v1804_v18 = vpop.eup %1803 }
 0x386   :  { %v400_v29 = vmul.f32 0.6931472, %v1804_v18 }
 0x387   :  { %v1806_v0 = vpop.eup %1805 }
 0x388   :  { %v401_v51 = vmax.f32 %v400_v29, -100.0  ;;  %v404_v33 = vmul.f32 0.6931472, %v1806_v0 }
 0x38a   :  { %v405_v43 = vmax.f32 %v404_v33, -100.0  ;;  %v406_v24 = vmul.f32 %v2323_v45, %v401_v51  ;;  %v1808_v45 = vld [vmem:[%s2723_s0 + $0x8] sm:$0x3f] }
 0x38c   :  { %v408_v62 = vmul.f32 %v407_v48, %v405_v43 }
 0x38e   :  { %v409_v13 = vadd.f32 %v408_v62, %v406_v24  ;;  %v51_v24 = vld [vmem:[%s2727_s1 + $0x30] sm:$0x3f] }
 0x390   :  { %v410_v5 = vsub.f32 0.0, %v409_v13 }
 0x392   :  { %v411_v11 = vmul.f32 %v2427_v23, %v410_v5 }
 0x394   :  { %v412_v56 = vsel %vm243_vm10, %v411_v11, 0.0 }
 0x395   :  { %413 = vadd.xlane.f32.xlu1 %v412_v56  ;;  %v1813_v56 = vld [vmem:[%s2723_s0 + $0x30] sm:$0x3f] }
 0x39d   :  { %v428_v12 = vpop.permute.xlu1 %427 }
 0x39e   :  { %v478_v28 = vmul.f32 %v1807_v7, %v428_v12  ;;  %v542_v40 = vmul.f32 %v428_v12, %v45_v20 }
 0x3a0   :  { %v486_v23 = vsel %vm2756_vm1, %v478_v28, 0.0  ;;  %v550_v27 = vsel %vm2758_vm14, %v542_v40, 0.0  ;;  %vm2764_vm1 = vmmov %vm2757_vm0 }
 0x3a1   :  { %v435_v32 = vpop.permute.xlu1 %434  ;;  %v487_v3 = vrot.slane %v486_v23, 4  ;;  %v551_v41 = vrot.slane %v550_v27, 4  ;;  %vm2765_vm14 = vmmov %vm2757_vm0 }
 0x3a2   :  { %v479_v21 = vmul.f32 %v1808_v45, %v435_v32  ;;  %v543_v42 = vmul.f32 %v435_v32, %v46_v30 }
 0x3a3   :  { %v488_v25 = vadd.f32 %v487_v3, %v486_v23  ;;  %v2580_v26 = vadd.f32 %v551_v41, %v550_v27 }
 0x3a4   :  { %v493_v61 = vsel %vm2757_vm0, %v479_v21, 0.0  ;;  %v557_v6 = vsel %vm2761_vm12, %v543_v42, 0.0  ;;  %vm2768_vm12 = vmmov %vm2757_vm0 }
 0x3a5   :  { %v442_v54 = vpop.permute.xlu1 %441  ;;  %v494_v50 = vrot.slane %v493_v61, 4  ;;  %v489_v63 = vrot.slane %v488_v25, 2  ;;  %v558_v17 = vrot.slane %v557_v6, 4  ;;  %v553_v18 = vrot.slane %v2580_v26, 2 }
 0x3a6   :  { %v480_v9 = vmul.f32 %v1809_v49, %v442_v54  ;;  %v544_v35 = vmul.f32 %v442_v54, %v47_v55 }
 0x3a7   :  { %v495_v37 = vadd.f32 %v494_v50, %v493_v61  ;;  %v490_v15 = vadd.f32 %v489_v63, %v488_v25  ;;  %v2605_v28 = vadd.f32 %v558_v17, %v557_v6  ;;  %v52_v61 = vld [vmem:[%s2727_s1 + $0x38] sm:$0x3f] }
 0x3a8   :  { %v500_v1 = vsel %vm2759_vm2, %v480_v9, 0.0  ;;  %v564_v33 = vsel %vm2764_vm1, %v544_v35, 0.0  ;;  %vm2766_vm2 = vmmov %vm2757_vm0 }
 0x3a9   :  { %v449_v44 = vpop.permute.xlu1 %448  ;;  %v501_v16 = vrot.slane %v500_v1, 4  ;;  %v496_v36 = vrot.slane %v495_v37, 2  ;;  %v491_v7 = vrot.slane %v490_v15, 1  ;;  %v565_v45 = vrot.slane %v564_v33, 4 }
 0x3aa   :  { %v481_v14 = vmul.f32 %v1810_v59, %v449_v44  ;;  %v545_v29 = vmul.f32 %v449_v44, %v48_v10 }
 0x3ab   :  { %v502_v53 = vadd.f32 %v501_v16, %v500_v1  ;;  %v497_v13 = vadd.f32 %v496_v36, %v495_v37  ;;  %v1814_v1 = vld [vmem:[%s2723_s0 + $0x38] sm:$0x3f] }
 0x3ac   :  { %v507_v46 = vsel %vm2760_vm11, %v481_v14, 0.0  ;;  %v571_v21 = vsel %vm2757_vm0, %v545_v29, 0.0  ;;  %vm2767_vm11 = vmmov %vm2757_vm0 }
 0x3ad   :  { %v456_v8 = vpop.permute.xlu1 %455  ;;  %v508_v58 = vrot.slane %v507_v46, 4  ;;  %v503_v51 = vrot.slane %v502_v53, 2  ;;  %v498_v30 = vrot.slane %v497_v13, 1  ;;  %v572_v14 = vrot.slane %v571_v21, 4 }
 0x3ae   :  { %v482_v22 = vmul.f32 %v1811_v47, %v456_v8  ;;  %v546_v43 = vmul.f32 %v456_v8, %v49_v4 }
 0x3af   :  { %v509_v2 = vadd.f32 %v508_v58, %v507_v46  ;;  %v504_v54 = vadd.f32 %v503_v51, %v502_v53  ;;  %v566_v58 = vadd.f32 %v565_v45, %v564_v33  ;;  %v573_v35 = vadd.f32 %v572_v14, %v571_v21 }
 0x3b0   :  { %v514_v60 = vsel %vm2762_vm13, %v482_v22, 0.0  ;;  %v578_v49 = vsel %vm2766_vm2, %v546_v43, 0.0  ;;  %vm2769_vm13 = vmmov %vm2757_vm0  ;;  %v499_v36 = vadd.f32 %v498_v30, %v497_v13  ;;  %v560_v43 = vrot.slane %v2605_v28, 2 }
 0x3b1   :  { %v515_v39 = vrot.slane %v514_v60, 4  ;;  %v463_v31 = vpop.permute.xlu1 %462  ;;  %v510_v5 = vrot.slane %v509_v2, 2  ;;  %v579_v46 = vrot.slane %v578_v49, 4  ;;  %v505_v55 = vrot.slane %v504_v54, 1 }
 0x3b2   :  { %v483_v57 = vmul.f32 %v1812_v34, %v463_v31  ;;  %v547_v11 = vmul.f32 %v463_v31, %v50_v38 }
 0x3b3   :  { %v516_v19 = vadd.f32 %v515_v39, %v514_v60  ;;  %v511_v44 = vadd.f32 %v510_v5, %v509_v2  ;;  %v580_v2 = vadd.f32 %v579_v46, %v578_v49  ;;  %v506_v17 = vadd.f32 %v505_v55, %v504_v54 }
 0x3b4   :  { %v521_v0 = vsel %vm2763_vm15, %v483_v57, 0.0  ;;  %v585_v50 = vsel %vm2767_vm11, %v547_v11, 0.0  ;;  %vm2770_vm15 = vmmov %vm2757_vm0  ;;  %v492_v57 = vadd.f32 %v491_v7, %v490_v15 }
 0x3b5   :  { %v522_v48 = vrot.slane %v521_v0, 4  ;;  %v470_v62 = vpop.permute.xlu1 %469  ;;  %v517_v32 = vrot.slane %v516_v19, 2  ;;  %v586_v47 = vrot.slane %v585_v50, 4  ;;  %v512_v63 = vrot.slane %v511_v44, 1 }
 0x3b6   :  { %v484_v12 = vmul.f32 %v1813_v56, %v470_v62  ;;  %v548_v40 = vmul.f32 %v470_v62, %v51_v24  ;;  %v574_v24 = vrot.slane %v573_v35, 2  ;;  %v614_v5 = vsel %vm228_vm3, %v499_v36, %v492_v57 }
 0x3b7   :  { %v523_v20 = vadd.f32 %v522_v48, %v521_v0  ;;  %v518_v25 = vadd.f32 %v517_v32, %v516_v19  ;;  %v587_v19 = vadd.f32 %v586_v47, %v585_v50  ;;  %v513_v29 = vadd.f32 %v512_v63, %v511_v44 }
 0x3b8   :  { %v528_v23 = vsel %vm2765_vm14, %v484_v12, 0.0  ;;  %v592_v42 = vsel %vm2768_vm12, %v548_v40, 0.0  ;;  %v567_v48 = vrot.slane %v566_v58, 2  ;;  %v581_v11 = vrot.slane %v580_v2, 2 }
 0x3b9   :  { %v524_v9 = vrot.slane %v523_v20, 2  ;;  %v529_v3 = vrot.slane %v528_v23, 4  ;;  %v477_v27 = vpop.permute.xlu1 %476  ;;  %v593_v6 = vrot.slane %v592_v42, 4  ;;  %v519_v10 = vrot.slane %v518_v25, 1 }
 0x3ba   :  { %v485_v59 = vmul.f32 %v1814_v1, %v477_v27  ;;  %v549_v37 = vmul.f32 %v477_v27, %v52_v61  ;;  %v615_v12 = vsel %vm230_vm4, %v506_v17, %v614_v5  ;;  %v588_v15 = vrot.slane %v587_v19, 2 }
 0x3bb   :  { %v530_v41 = vadd.f32 %v529_v3, %v528_v23  ;;  %v525_v16 = vadd.f32 %v524_v9, %v523_v20  ;;  %v594_v0 = vadd.f32 %v593_v6, %v592_v42  ;;  %v520_v62 = vadd.f32 %v519_v10, %v518_v25 }
 0x3bc   :  { %v535_v8 = vsel %vm2769_vm13, %v485_v59, 0.0  ;;  %v599_v53 = vsel %vm2770_vm15, %v549_v37, 0.0  ;;  %v616_v32 = vsel %vm232_vm5, %v513_v29, %v615_v12  ;;  %v561_v23 = vadd.f32 %v560_v43, %v2605_v28 }
 0x3bd   :  { %v531_v22 = vrot.slane %v530_v41, 2  ;;  %v536_v60 = vrot.slane %v535_v8, 4  ;;  %v600_v31 = vrot.slane %v599_v53, 4  ;;  %v526_v4 = vrot.slane %v525_v16, 1 }
 0x3be   :  { %v595_v20 = vrot.slane %v594_v0, 2  ;;  %v568_v40 = vadd.f32 %v567_v48, %v566_v58  ;;  %v575_v54 = vadd.f32 %v574_v24, %v573_v35  ;;  %v617_v49 = vsel %vm234_vm6, %v520_v62, %v616_v32 }
 0x3bf   :  { %v532_v39 = vadd.f32 %v531_v22, %v530_v41  ;;  %v537_v34 = vadd.f32 %v536_v60, %v535_v8  ;;  %v601_v33 = vadd.f32 %v600_v31, %v599_v53  ;;  %v527_v13 = vadd.f32 %v526_v4, %v525_v16  ;;  %v1815_v41 = vld [vmem:[%s2722_s3] sm:$0xff] }
 0x3c0   :  { %v554_v9 = vadd.f32 %v553_v18, %v2580_v26  ;;  %v582_v3 = vadd.f32 %v581_v11, %v580_v2  ;;  %v589_v30 = vadd.f32 %v588_v15, %v587_v19  ;;  %v596_v50 = vadd.f32 %v595_v20, %v594_v0 }
 0x3c1   :  { %v533_v38 = vrot.slane %v532_v39, 1  ;;  %v538_v51 = vrot.slane %v537_v34, 2  ;;  %v602_v21 = vrot.slane %v601_v33, 2  ;;  %v618_v61 = vsel %vm236_vm7, %v527_v13, %v617_v49 }
 0x3c2   :  { %v562_v28 = vrot.slane %v561_v23, 1  ;;  %v569_v14 = vrot.slane %v568_v40, 1  ;;  %v576_v25 = vrot.slane %v575_v54, 1  ;;  %v555_v26 = vrot.slane %v554_v9, 1 }
 0x3c3   :  { %v539_v56 = vadd.f32 %v538_v51, %v537_v34  ;;  %v534_v7 = vadd.f32 %v533_v38, %v532_v39  ;;  %v603_v1 = vadd.f32 %v602_v21, %v601_v33  ;;  %v583_v18 = vrot.slane %v582_v3, 1 }
 0x3c4   :  { %v590_v46 = vrot.slane %v589_v30, 1  ;;  %v597_v55 = vrot.slane %v596_v50, 1  ;;  %v563_v63 = vadd.f32 %v562_v28, %v561_v23  ;;  %v570_v6 = vadd.f32 %v569_v14, %v568_v40 }
 0x3c5   :  { %v540_v45 = vrot.slane %v539_v56, 1  ;;  %v619_v44 = vsel %vm238_vm8, %v534_v7, %v618_v61  ;;  %v604_v58 = vrot.slane %v603_v1, 1  ;;  %v577_v60 = vadd.f32 %v576_v25, %v575_v54 }
 0x3c6   :  { %v556_v35 = vadd.f32 %v555_v26, %v554_v9  ;;  %v584_v10 = vadd.f32 %v583_v18, %v582_v3  ;;  %v591_v36 = vadd.f32 %v590_v46, %v589_v30  ;;  %v598_v17 = vadd.f32 %v597_v55, %v596_v50 }
 0x3c7   :  { %v541_v27 = vadd.f32 %v540_v45, %v539_v56  ;;  %v605_v19 = vadd.f32 %v604_v58, %v603_v1 }
 0x3c9   :  { %v620_v59 = vsel %vm240_vm9, %v541_v27, %v619_v44 }
 0x3ca   :  { %v622_v42 = vsub.f32 %v1815_v41, %v620_v59 }
 0x3cc   :  { %v624_v16 = vrot.slane %v622_v42, 1  ;;  %v625_v8 = vrot.slane %v622_v42, 2  ;;  %v626_v37 = vrot.slane %v622_v42, 3  ;;  %v627_v22 = vrot.slane %v622_v42, 4 }
 0x3cd   :  { %v628_v53 = vrot.slane %v622_v42, 5  ;;  %v630_v39 = vrot.slane %v622_v42, 7  ;;  %v629_v31 = vrot.slane %v622_v42, 6  ;;  %v1622_v2 = vpop.permute.xlu0 %1621  ;;  %v639_v0 = vsub.f32 %v556_v35, %v622_v42 }
 0x3ce   :  { %v1625_v47 = vpop.permute.xlu1 %1624  ;;  %v640_v4 = vsub.f32 %v563_v63, %v624_v16  ;;  %v641_v34 = vsub.f32 %v570_v6, %v625_v8  ;;  %v642_v57 = vsub.f32 %v577_v60, %v626_v37  ;;  %v643_v29 = vsub.f32 %v584_v10, %v627_v22 }
 0x3cf   :  { %v644_v51 = vsub.f32 %v591_v36, %v628_v53  ;;  %v2635_v33 = vsub.f32 %v605_v19, %v630_v39  ;;  %v1651_v43 = vrot.slane %v1625_v47, %v2059_v52  ;;  %v1647_v48 = vrot.slane %v1622_v2, %v2059_v52 }
 0x3d0   :  { %v645_v24 = vsub.f32 %v598_v17, %v629_v31  ;;  %v648_v5 = vand.u32 2147483647, %v640_v4  ;;  %v649_v11 = vand.u32 2147483647, %v641_v34  ;;  %v650_v13 = vand.u32 2147483647, %v642_v57 }
 0x3d1   :  { %v651_v12 = vand.u32 2147483647, %v643_v29  ;;  %v647_v15 = vand.u32 2147483647, %v639_v0  ;;  %v652_v7 = vand.u32 2147483647, %v644_v51  ;;  %v1676_v32 = vsel %vm228_vm3, %v1651_v43, %v1647_v48 }
 0x3d2   :  { %v1628_v38 = vpop.permute.xlu1 %1627  ;;  %v653_v20 = vand.u32 2147483647, %v645_v24  ;;  %v654_v45 = vand.u32 2147483647, %v2635_v33  ;;  %vm2645_vm1 = vcmp.lt.f32.partialorder %v648_v5, 0.04 }
 0x3d3   :  { %v1655_v62 = vrot.slane %v1628_v38, %v2059_v52  ;;  %vm2649_vm0 = vcmp.lt.f32.partialorder %v649_v11, 0.04  ;;  %vm2653_vm14 = vcmp.lt.f32.partialorder %v650_v13, 0.04  ;;  %vm2657_vm2 = vcmp.lt.f32.partialorder %v651_v12, 0.04 }
 0x3d4   :  { %v663_v9 = vmul.f32 0.5, %v639_v0  ;;  %v664_v3 = vmul.f32 0.5, %v640_v4  ;;  %v665_v61 = vmul.f32 0.5, %v641_v34  ;;  %v666_v27 = vmul.f32 0.5, %v642_v57 }
 0x3d5   :  { %v1677_v21 = vsel %vm230_vm4, %v1655_v62, %v1676_v32  ;;  %vm2661_vm11 = vcmp.lt.f32.partialorder %v647_v15, 0.04  ;;  %vm2665_vm12 = vcmp.lt.f32.partialorder %v652_v7, 0.04  ;;  %v667_v1 = vmul.f32 0.5, %v643_v29 }
 0x3d6   :  { %v668_v59 = vmul.f32 0.5, %v644_v51  ;;  %v1711_v28 = vadd.f32 -0.02, %v647_v15  ;;  %v1712_v14 = vadd.f32 -0.02, %v648_v5  ;;  %v669_v16 = vmul.f32 0.5, %v645_v24 }
 0x3d7   :  { %v2640_v56 = vpop.permute.xlu1 %1630  ;;  %vm2671_vm13 = vcmp.lt.f32.partialorder %v653_v20, 0.04  ;;  %v1713_v42 = vadd.f32 -0.02, %v649_v11  ;;  %v1714_v26 = vadd.f32 -0.02, %v650_v13  ;;  %v671_v58 = vmul.f32 %v663_v9, %v639_v0 }
 0x3d8   :  { %v1659_v25 = vrot.slane %v2640_v56, %v2059_v52  ;;  %v1715_v18 = vadd.f32 -0.02, %v651_v12  ;;  %vm2675_vm15 = vcmp.lt.f32.partialorder %v654_v45, 0.04  ;;  %v670_v8 = vmul.f32 0.5, %v2635_v33 }
 0x3d9   :  { %v1716_v37 = vadd.f32 -0.02, %v652_v7  ;;  %v1717_v55 = vadd.f32 -0.02, %v653_v20  ;;  %v1718_v47 = vadd.f32 -0.02, %v654_v45  ;;  %v672_v60 = vmul.f32 %v664_v3, %v640_v4  ;;  %v1643_v20 = vpop.permute.xlu0 %1642 }
 0x3da   :  { %v688_v22 = vmul.f32 0.04, %v1712_v14  ;;  %v689_v63 = vmul.f32 0.04, %v1713_v42  ;;  %v673_v53 = vmul.f32 %v665_v61, %v641_v34  ;;  %v690_v35 = vmul.f32 0.04, %v1714_v26 }
 0x3db   :  { %v691_v10 = vmul.f32 0.04, %v1715_v18  ;;  %v674_v39 = vmul.f32 %v666_v27, %v642_v57  ;;  %v675_v31 = vmul.f32 %v667_v1, %v643_v29  ;;  %v687_v36 = vmul.f32 0.04, %v1711_v28 }
 0x3dc   :  { %v1634_v30 = vpop.permute.xlu1 %1633  ;;  %v692_v2 = vmul.f32 0.04, %v1716_v37  ;;  %v676_v17 = vmul.f32 %v668_v59, %v644_v51  ;;  %v693_v19 = vmul.f32 0.04, %v1717_v55  ;;  %v696_v38 = vsel %vm2645_vm1, %v672_v60, %v688_v22 }
 0x3dd   :  { %v697_v0 = vsel %vm2649_vm0, %v673_v53, %v689_v63  ;;  %v1663_v43 = vrot.slane %v1634_v30, %v2059_v52  ;;  %v677_v48 = vmul.f32 %v669_v16, %v645_v24  ;;  %v694_v62 = vmul.f32 0.04, %v1718_v47 }
 0x3de   :  { %v698_v4 = vsel %vm2653_vm14, %v674_v39, %v690_v35  ;;  %v699_v29 = vsel %vm2657_vm2, %v675_v31, %v691_v10  ;;  %v711_v51 = vrot.slane %v696_v38, 7  ;;  %v713_v5 = vrot.slane %v697_v0, 6 }
 0x3df   :  { %v678_v13 = vmul.f32 %v670_v8, %v2635_v33  ;;  %v695_v56 = vsel %vm2661_vm11, %v671_v58, %v687_v36  ;;  %v700_v24 = vsel %vm2665_vm12, %v676_v17, %v692_v2  ;;  %v1678_v12 = vsel %vm232_vm5, %v1659_v25, %v1677_v21 }
 0x3e0   :  { %v1637_v6 = vpop.permute.xlu1 %1636  ;;  %v701_v15 = vsel %vm2671_vm13, %v677_v48, %v693_v19  ;;  %v712_v7 = vsel %vm228_vm3, %v711_v51, %v695_v56  ;;  %v715_v32 = vrot.slane %v698_v4, 5  ;;  %v1679_v45 = vsel %vm234_vm6, %v1663_v43, %v1678_v12  ;;  %v2787_v43 = vld [vmem:[#allocation2_spill] sm:$0xff] }
 0x3e1   :  { %v1667_v34 = vrot.slane %v1637_v6, %v2059_v52  ;;  %v702_v33 = vsel %vm2675_vm15, %v678_v13, %v694_v62  ;;  %v714_v23 = vsel %vm230_vm4, %v713_v5, %v712_v7  ;;  %v717_v40 = vrot.slane %v699_v29, 4 }
 0x3e2   :  { %v716_v49 = vsel %vm232_vm5, %v715_v32, %v714_v23  ;;  %v719_v21 = vrot.slane %v700_v24, 3  ;;  %v721_v3 = vrot.slane %v701_v15, 2  ;;  %v1675_v27 = vrot.slane %v1643_v20, %v2059_v52 }
 0x3e3   :  { %v1680_v54 = vsel %vm236_vm7, %v1667_v34, %v1679_v45  ;;  %v718_v9 = vsel %vm234_vm6, %v717_v40, %v716_v49  ;;  %v723_v44 = vrot.slane %v702_v33, 1  ;;  %vm726_vm3 = vcmask 15360  }
 0x3e4   :  { %v1640_v57 = vpop.permute.xlu1 %1639  ;;  %v720_v30 = vsel %vm236_vm7, %v719_v21, %v718_v9  ;;  %vm1696_vm4 = vcmp.eq.s32.totalorder %v2787_v43, 2  ;;  %vm1695_vm5 = vcmp.eq.s32.totalorder %v2787_v43, 1  ;;  %vm1694_vm6 = vcmp.eq.s32.totalorder %v2787_v43, 0 }
 0x3e5   :  { %v1671_v11 = vrot.slane %v1640_v57, %v2059_v52  ;;  %v722_v50 = vsel %vm238_vm8, %v721_v3, %v720_v30 }
 0x3e6   :  { %v724_v1 = vsel %vm240_vm9, %v723_v44, %v722_v50 }
 0x3e7   :  { %v1681_v61 = vsel %vm238_vm8, %v1671_v11, %v1680_v54  ;;  %v727_v28 = vsel %vm726_vm3, %v724_v1, 0.0 }
 0x3e8   :  { %v1682_v59 = vsel %vm240_vm9, %v1675_v27, %v1681_v61  ;;  %728 = vadd.xlane.f32.xlu0 %v727_v28 }
 0x3e9   :  { %v1684_v14 = vsel %vm243_vm10, %v1682_v59, 0.0 }
 0x3ec   :  { %1685 = vadd.xlane.f32.xlu0 %v1684_v14 }
 0x401   :  { %v917_v16 = vpop.xlane.xlu0 %916 }
 0x402   :  { %v918_v8 = vrot.slane %v917_v16, 4 }
 0x404   :  { %v919_v37 = vadd.f32 %v918_v8, %v917_v16 }
 0x406   :  { %v920_v55 = vrot.slane %v919_v37, 2 }
 0x408   :  { %v921_v6 = vadd.f32 %v920_v55, %v919_v37 }
 0x40a   :  { %v922_v39 = vrot.slane %v921_v6, 1 }
 0x40c   :  { %v923_v19 = vadd.f32 %v922_v39, %v921_v6 }
 0x422   :  { %v414_v25 = vpop.xlane.xlu1 %413 }
 0x423   :  { %v415_v41 = vrot.slane %v414_v25, 4 }
 0x425   :  { %v416_v42 = vadd.f32 %v415_v41, %v414_v25 }
 0x427   :  { %v417_v26 = vrot.slane %v416_v42, 2 }
 0x429   :  { %v418_v52 = vadd.f32 %v417_v26, %v416_v42 }
 0x42b   :  { %v419_v18 = vrot.slane %v418_v52, 1 }
 0x42d   :  { %v420_v46 = vadd.f32 %v419_v18, %v418_v52 }
 0x42f   :  { %1727 = vpush %v420_v46 }
 0x460   :  { %s1728_s3 = spop %1727 }
 0x461   :  { %v1702_v57 = vstv %s1728_s3 }
 0x475   :  { %v729_v58 = vpop.xlane.xlu0 %728 }
 0x476   :  { %v730_v47 = vrot.slane %v729_v58, 4 }
 0x478   :  { %v731_v22 = vadd.f32 %v730_v47, %v729_v58 }
 0x479   :  { %v1686_v63 = vpop.xlane.xlu0 %1685 }
 0x47a   :  { %v732_v60 = vrot.slane %v731_v22, 2  ;;  %v1687_v53 = vrot.slane %v1686_v63, 4 }
 0x47c   :  { %v1688_v35 = vadd.f32 %v1687_v53, %v1686_v63  ;;  %v733_v10 = vadd.f32 %v732_v60, %v731_v22 }
 0x47e   :  { %v1689_v31 = vrot.slane %v1688_v35, 2  ;;  %v734_v36 = vrot.slane %v733_v10, 1 }
 0x480   :  { %v1690_v2 = vadd.f32 %v1689_v31, %v1688_v35  ;;  %v735_v17 = vadd.f32 %v734_v36, %v733_v10 }
 0x482   :  { %1729 = vpush %v735_v17  ;;  %v1691_v38 = vrot.slane %v1690_v2, 1 }
 0x483   :  { %1731 = vpush %v923_v19 }
 0x484   :  { %v1692_v0 = vadd.f32 %v1691_v38, %v1690_v2 }
 0x486   :  { %1733 = vpush %v1692_v0 }
 0x4b3   :  { %s1730_s15 = spop %1729 }
 0x4b4   :  { %s1732_s16 = spop %1731  ;;  %v1700_v4 = vstv %s1730_s15 }
 0x4b5   :  { %v1697_v48 = vstv %s1732_s16 }
 0x4b7   :  { %s1734_s17 = spop %1733 }
 0x4b8   :  { %v1698_v62 = vstv %s1734_s17 }
 0x4b9   :  { %v1699_v34 = vsel %vm1696_vm4, %v1697_v48, %v1698_v62 }
 0x4ba   :  { %v1701_v29 = vsel %vm1695_vm5, %v1700_v4, %v1699_v34 }
 0x4bb   :  { %v1703_v51 = vsel %vm1694_vm6, %v1702_v57, %v1701_v29 }
 0x4bc   :  { %1704 = vst [vmem:[%s2728_s8] sm:$0xf] %v1703_v51 }

</bundles_post_ra>
